<compile_context>
chip_gen: v6e
topology: v6e:2x2x1
jax: 0.10.0
libtpu: 0.0.40
codegen_flags: <defaults>
</compile_context>

<pallas_src>
import functools

import jax
import jax.numpy as jnp
from jax.experimental import pallas as pl
from jax.experimental.pallas import tpu as pltpu


def _attn_pool_kernel(x_ref, wq_ref, bq_ref, wk_ref, bk_ref, wv_ref, bv_ref,
                      wc_ref, bc_ref, sel_ref, selT_ref, out_ref, *,
                      num_heads):
    # x_ref   : (L, B, E)   block of B batch rows (seq-first layout, stream dtype)
    # w*_ref  : pre-transposed projection weights (y = x @ W), stream dtype
    # b*_ref  : (1, ...)    biases, f32
    # sel_ref : (E, H)      block-diagonal head selector (0/1), f32
    # selT_ref: (H, E)      its transpose, f32
    # out_ref : (B, Dout_pad)  lane-dense (Dout padded to a multiple of 128)
    L, B, E = x_ref.shape
    H = num_heads
    head_dim = E // H
    scale = float(head_dim) ** -0.5
    inv_L = 1.0 / float(L)

    x = x_ref[...]                                            # (L, B, E)
    x2d = x.reshape(L * B, E)                                 # sublane-only reshape

    # ---- query projection of the mean-pooled row (the only query row) ----
    pooled = jnp.mean(x.astype(jnp.float32), axis=0).astype(x.dtype)     # (B, E)
    q = (jnp.dot(pooled, wq_ref[...], preferred_element_type=jnp.float32)
         + bq_ref[...]) * scale                                          # (B, E) f32

    # ---- k / v projections of the L sequence rows (separate matmuls: no
    #      lane-crossing slice of a fused (E,2E) result at small E) ----
    k_x = (jnp.dot(x2d, wk_ref[...], preferred_element_type=jnp.float32)
           + bk_ref[...]).reshape(L, B, E)                               # f32
    v_x = (jnp.dot(x2d, wv_ref[...], preferred_element_type=jnp.float32)
           + bv_ref[...]).reshape(L, B, E)                               # f32

    # ---- fused multi-head scores via the block-diagonal head selector ----
    # s_x[l,b,h] = sum_{d in head h} q[b,d] * k_x[l,b,d]
    sel = sel_ref[...]                                                   # (E, H)
    s_x = jnp.dot((q[None, :, :] * k_x).reshape(L * B, E), sel,
                  preferred_element_type=jnp.float32).reshape(L, B, H)
    # NOTE: k_pool / v_pool are exact means of the per-row projections ONLY
    # because the k/v projections are affine with a shared bias (no masking,
    # no per-key scaling).  Hence the pooled-key score is the mean score.
    s_p = jnp.mean(s_x, axis=0)                                          # (B, H)

    # ---- softmax over the L+1 keys (pooled key + L sequence keys), f32 ----
    m = jnp.maximum(s_p, jnp.max(s_x, axis=0))                           # (B, H)
    e_p = jnp.exp(s_p - m)                                               # (B, H)
    e_x = jnp.exp(s_x - m[None, :, :])                                   # (L, B, H)
    inv_denom = pl.reciprocal(e_p + jnp.sum(e_x, axis=0), approx=False)  # (B, H)
    # Fold the pooled-key prob into the per-row probs in cheap H-lane space:
    # v_pool = mean_l v_x  =>  p_p * v_pool = sum_l (p_p / L) * v_x[l].
    p_comb = (e_x + (e_p * inv_L)[None, :, :]) * inv_denom[None, :, :]   # (L, B, H)

    # ---- expand per-head probs to E lanes (one small-K MXU pass) & combine ----
    w = jnp.dot(p_comb.reshape(L * B, H), selT_ref[...],
                preferred_element_type=jnp.float32).reshape(L, B, E)
    attn = jnp.sum(w * v_x, axis=0)                                      # (B, E) f32

    # ---- output projection (lane-dense padded Dout) ----
    out = (jnp.dot(attn.astype(wc_ref.dtype), wc_ref[...],
                   preferred_element_type=jnp.float32) + bc_ref[...])
    out_ref[...] = out.astype(out_ref.dtype)


def attention_pool_1d(x, params, num_heads, *, block_n=None,
                      stream_dtype=None, vmem_limit_bytes=None):
    """x: (L, N, E) seq-first, as the torch module expects.

    Returns (N, output_dim), matching `AttentionPool1d.forward(x).squeeze(0)`.
    `stream_dtype=jnp.bfloat16` halves HBM traffic on v6e/v7x (f32 accumulation
    and f32 softmax math are kept inside the kernel).
    """
    L, N, E = x.shape
    assert E % num_heads == 0
    head_dim = E // num_heads
    wq, bq, wk, bk, wv, bv, wc, bc = params
    Dout = wc.shape[0]
    out_dtype = x.dtype

    cdtype = stream_dtype or x.dtype
    itemsize = jnp.dtype(cdtype).itemsize

    # ---- lane-dense output: pad Dout up to a multiple of 128 ----
    Dout_pad = ((Dout + 127) // 128) * 128

    # ---- batch block selection (biggest block under a VMEM budget) ----
    if block_n is None:
        x_budget = 4 << 20                       # double-buffered x slab budget
        cap = max(8, x_budget // max(1, 2 * L * E * itemsize))
        block_n = min(N, 256, cap)               # single step when N is small
    B = min(block_n, N)
    if B < N:
        B = max(8, (B // 8) * 8)                 # sublane-aligned partial block
    N_pad = pl.cdiv(N, B) * B

    # ---- wrapper-side layout plumbing (pre-transpose, pad, cast) ----
    xs = x.astype(cdtype)
    if N_pad != N:
        xs = jnp.concatenate(
            [xs, jnp.zeros((L, N_pad - N, E), xs.dtype)], axis=1)

    wq_t = wq.T.astype(cdtype)                                     # (E, E)
    wk_t = wk.T.astype(cdtype)                                     # (E, E)
    wv_t = wv.T.astype(cdtype)                                     # (E, E)
    wc_t = jnp.zeros((E, Dout_pad), cdtype).at[:, :Dout].set(wc.T.astype(cdtype))
    bq2 = bq[None, :].astype(jnp.float32)
    bk2 = bk[None, :].astype(jnp.float32)
    bv2 = bv[None, :].astype(jnp.float32)
    bc2 = jnp.zeros((1, Dout_pad), jnp.float32).at[:, :Dout].set(bc.astype(jnp.float32))

    # Static block-diagonal head selector: sel[d, h] = 1 iff d // head_dim == h.
    sel = (jnp.arange(E)[:, None] // head_dim
           == jnp.arange(num_heads)[None, :]).astype(jnp.float32)  # (E, H)
    selT = sel.T                                                    # (H, E)

    # ---- VMEM limit derived from block sizes, cross-generation-safe ceiling ----
    if vmem_limit_bytes is None:
        const_bytes = ((3 * E * E + E * Dout_pad) * itemsize
                       + (3 * E + Dout_pad) * 4 + 2 * E * num_heads * 4)
        block_bytes = 2 * L * B * E * itemsize + 2 * B * Dout_pad * 4
        vmem_limit_bytes = int(min(48 << 20,
                                   max(32 << 20, 4 * (const_bytes + block_bytes))))

    def build(single_buffer_consts):
        cmode = {}
        if single_buffer_consts:
            # Constant-index blocks never change across the grid; single
            # buffering halves their VMEM residency (headroom for larger B).
            cmode = dict(pipeline_mode=pl.Buffered(buffer_count=1))

        def const(shape):
            return pl.BlockSpec(shape, lambda i: (0,) * len(shape), **cmode)

        return pl.pallas_call(
            functools.partial(_attn_pool_kernel, num_heads=num_heads),
            out_shape=jax.ShapeDtypeStruct((N_pad, Dout_pad), out_dtype),
            grid_spec=pltpu.PrefetchScalarGridSpec(
                num_scalar_prefetch=0,
                grid=(N_pad // B,),
                in_specs=[
                    # (L, B, E) slab per step; x stays in its (L, N, E) HBM layout.
                    pl.BlockSpec((L, B, E), lambda i: (0, i, 0)),
                    const((E, E)), const((1, E)),                # q proj
                    const((E, E)), const((1, E)),                # k proj
                    const((E, E)), const((1, E)),                # v proj
                    const((E, Dout_pad)), const((1, Dout_pad)),  # c proj (padded)
                    const((E, num_heads)), const((num_heads, E)),  # head selectors
                ],
                out_specs=pl.BlockSpec((B, Dout_pad), lambda i: (i, 0)),
            ),
            compiler_params=pltpu.CompilerParams(
                dimension_semantics=("parallel",),
                vmem_limit_bytes=vmem_limit_bytes),
        )

    args = (xs, wq_t, bq2, wk_t, bk2, wv_t, bv2, wc_t, bc2, sel, selT)
    try:
        out = build(True)(*args)
    except Exception:
        # TODO(synk): some jax versions reject Buffered(1) on the main grid
        # pipeline; fall back to default double-buffered constant blocks.
        out = build(False)(*args)

    return out[:N, :Dout]                                          # (N, Dout)


def ref_forward(x, params, num_heads):
    """Pure-JAX reference mirroring F.multi_head_attention_forward semantics."""
    wq, bq, wk, bk, wv, bv, wc, bc = params
    L, N, E = x.shape
    hd = E // num_heads
    pooled = x.mean(axis=0, keepdims=True)                    # (1, N, E)
    xc = jnp.concatenate([pooled, x], axis=0)                 # (L+1, N, E)
    q = xc[:1] @ wq.T + bq                                    # (1, N, E)
    k = xc @ wk.T + bk                                        # (L+1, N, E)
    v = xc @ wv.T + bv
    q = q * (float(hd) ** -0.5)
    qh = q.reshape(1, N, num_heads, hd)
    kh = k.reshape(L + 1, N, num_heads, hd)
    vh = v.reshape(L + 1, N, num_heads, hd)
    s = jnp.einsum('qnhd,knhd->nhqk', qh, kh)
    p = jax.nn.softmax(s, axis=-1)
    o = jnp.einsum('nhqk,knhd->qnhd', p, vh).reshape(1, N, E)
    out = o @ wc.T + bc
    return out[0]                                             # (N, Dout)


def init_params(key, embed_dim, output_dim):
    ks = jax.random.split(key, 8)
    s = embed_dim ** -0.5
    wq = jax.random.uniform(ks[0], (embed_dim, embed_dim), jnp.float32, -s, s)
    bq = jax.random.uniform(ks[1], (embed_dim,), jnp.float32, -s, s)
    wk = jax.random.uniform(ks[2], (embed_dim, embed_dim), jnp.float32, -s, s)
    bk = jax.random.uniform(ks[3], (embed_dim,), jnp.float32, -s, s)
    wv = jax.random.uniform(ks[4], (embed_dim, embed_dim), jnp.float32, -s, s)
    bv = jax.random.uniform(ks[5], (embed_dim,), jnp.float32, -s, s)
    wc = jax.random.uniform(ks[6], (output_dim, embed_dim), jnp.float32, -s, s)
    bc = jax.random.uniform(ks[7], (output_dim,), jnp.float32, -s, s)
    return (wq, bq, wk, bk, wv, bv, wc, bc)


if __name__ == "__main__":
    L, N, E = 8, 16, 32          # seq, batch, embed_dim
    num_heads = 4
    output_dim = 16

    root = jax.random.PRNGKey(0)
    kx, kp = jax.random.split(root)
    x = jax.random.normal(kx, (L, N, E), dtype=jnp.float32)
    params = init_params(kp, E, output_dim)

    ref = ref_forward(x, params, num_heads)

    # f32 path: auto block -> whole batch in one grid step at these toy shapes.
    out = attention_pool_1d(x, params, num_heads)
    out = jax.block_until_ready(out)
    assert out.shape == (N, output_dim)
    err = float(jnp.max(jnp.abs(out - ref)))
    assert jnp.allclose(out, ref, atol=2e-3, rtol=2e-3), (
        f"f32 mismatch vs reference: max abs err = {err}")

    # bf16-streamed path (the v6e/v7x memory-bandwidth configuration).
    out_bf = attention_pool_1d(x, params, num_heads, stream_dtype=jnp.bfloat16)
    out_bf = jax.block_until_ready(out_bf)
    err_bf = float(jnp.max(jnp.abs(out_bf - ref)))
    assert jnp.allclose(out_bf, ref, atol=5e-2, rtol=5e-2), (
        f"bf16 mismatch vs reference: max abs err = {err_bf}")

    print("KERNEL_OK")
</pallas_src>

<mosaic_0001>
module attributes {stable_mosaic.version = 11 : i64} {
  func.func @_attn_pool_kernel(%arg0: i32, %arg1: memref<8x16x32xf32, #tpu.memory_space<vmem>>, %arg2: memref<32x32xf32, #tpu.memory_space<vmem>>, %arg3: memref<1x32xf32, #tpu.memory_space<vmem>>, %arg4: memref<32x32xf32, #tpu.memory_space<vmem>>, %arg5: memref<1x32xf32, #tpu.memory_space<vmem>>, %arg6: memref<32x32xf32, #tpu.memory_space<vmem>>, %arg7: memref<1x32xf32, #tpu.memory_space<vmem>>, %arg8: memref<32x128xf32, #tpu.memory_space<vmem>>, %arg9: memref<1x128xf32, #tpu.memory_space<vmem>>, %arg10: memref<32x4xf32, #tpu.memory_space<vmem>>, %arg11: memref<4x32xf32, #tpu.memory_space<vmem>>, %arg12: memref<16x128xf32, #tpu.memory_space<vmem>>) attributes {dimension_semantics = [#tpu.dimension_semantics<parallel>], iteration_bounds = array<i64: 1>, scalar_prefetch = 0 : i64, scratch_operands = 0 : i64, tpu.core_type = #tpu.core_type<tc>, window_params = [{transform_indices = @transform_0, window_bounds = array<i64: 8, 16, 32>}, {pipeline_mode = #tpu.pipeline_mode<synchronous>, transform_indices = @transform_1, window_bounds = array<i64: 32, 32>}, {pipeline_mode = #tpu.pipeline_mode<synchronous>, transform_indices = @transform_2, window_bounds = array<i64: 1, 32>}, {pipeline_mode = #tpu.pipeline_mode<synchronous>, transform_indices = @transform_3, window_bounds = array<i64: 32, 32>}, {pipeline_mode = #tpu.pipeline_mode<synchronous>, transform_indices = @transform_4, window_bounds = array<i64: 1, 32>}, {pipeline_mode = #tpu.pipeline_mode<synchronous>, transform_indices = @transform_5, window_bounds = array<i64: 32, 32>}, {pipeline_mode = #tpu.pipeline_mode<synchronous>, transform_indices = @transform_6, window_bounds = array<i64: 1, 32>}, {pipeline_mode = #tpu.pipeline_mode<synchronous>, transform_indices = @transform_7, window_bounds = array<i64: 32, 128>}, {pipeline_mode = #tpu.pipeline_mode<synchronous>, transform_indices = @transform_8, window_bounds = array<i64: 1, 128>}, {pipeline_mode = #tpu.pipeline_mode<synchronous>, transform_indices = @transform_9, window_bounds = array<i64: 32, 4>}, {pipeline_mode = #tpu.pipeline_mode<synchronous>, transform_indices = @transform_10, window_bounds = array<i64: 4, 32>}, {transform_indices = @transform_11, window_bounds = array<i64: 16, 128>}]} {
    %c0 = arith.constant 0 : index
    %c0_0 = arith.constant 0 : index
    %c0_1 = arith.constant 0 : index
    %0 = vector.load %arg1[%c0, %c0_0, %c0_1] : memref<8x16x32xf32, #tpu.memory_space<vmem>>, vector<8x16x32xf32>
    %1 = vector.shape_cast %0 : vector<8x16x32xf32> to vector<128x32xf32>
    %cst = arith.constant dense<0.000000e+00> : vector<16x32xf32>
    %2 = vector.multi_reduction <add>, %0, %cst [0] : vector<8x16x32xf32> to vector<16x32xf32>
    %cst_2 = arith.constant 8.000000e+00 : f32
    %3 = vector.broadcast %cst_2 : f32 to vector<16x32xf32>
    %4 = arith.divf %2, %3 : vector<16x32xf32>
    %c0_3 = arith.constant 0 : index
    %c0_4 = arith.constant 0 : index
    %5 = vector.load %arg2[%c0_3, %c0_4] : memref<32x32xf32, #tpu.memory_space<vmem>>, vector<32x32xf32>
    %cst_5 = arith.constant dense<0.000000e+00> : vector<16x32xf32>
    %6 = tpu.matmul %4, %5, %cst_5 {dimension_numbers = #tpu.dot_dimension_numbers<[1], [0], [0], [1], [0, 0, 1, 1], [], []>} : vector<16x32xf32>, vector<32x32xf32>, vector<16x32xf32> -> vector<16x32xf32>
    %c0_6 = arith.constant 0 : index
    %c0_7 = arith.constant 0 : index
    %7 = vector.load %arg3[%c0_6, %c0_7] : memref<1x32xf32, #tpu.memory_space<vmem>>, vector<1x32xf32>
    %8 = vector.broadcast %7 : vector<1x32xf32> to vector<16x32xf32>
    %9 = arith.addf %6, %8 : vector<16x32xf32>
    %cst_8 = arith.constant 0.353553385 : f32
    %10 = vector.broadcast %cst_8 : f32 to vector<16x32xf32>
    %11 = arith.mulf %9, %10 : vector<16x32xf32>
    %c0_9 = arith.constant 0 : index
    %c0_10 = arith.constant 0 : index
    %12 = vector.load %arg4[%c0_9, %c0_10] : memref<32x32xf32, #tpu.memory_space<vmem>>, vector<32x32xf32>
    %cst_11 = arith.constant dense<0.000000e+00> : vector<128x32xf32>
    %13 = tpu.matmul %1, %12, %cst_11 {dimension_numbers = #tpu.dot_dimension_numbers<[1], [0], [0], [1], [0, 0, 1, 1], [], []>} : vector<128x32xf32>, vector<32x32xf32>, vector<128x32xf32> -> vector<128x32xf32>
    %c0_12 = arith.constant 0 : index
    %c0_13 = arith.constant 0 : index
    %14 = vector.load %arg5[%c0_12, %c0_13] : memref<1x32xf32, #tpu.memory_space<vmem>>, vector<1x32xf32>
    %15 = vector.broadcast %14 : vector<1x32xf32> to vector<128x32xf32>
    %16 = arith.addf %13, %15 : vector<128x32xf32>
    %17 = vector.shape_cast %16 : vector<128x32xf32> to vector<8x16x32xf32>
    %c0_14 = arith.constant 0 : index
    %c0_15 = arith.constant 0 : index
    %18 = vector.load %arg6[%c0_14, %c0_15] : memref<32x32xf32, #tpu.memory_space<vmem>>, vector<32x32xf32>
    %cst_16 = arith.constant dense<0.000000e+00> : vector<128x32xf32>
    %19 = tpu.matmul %1, %18, %cst_16 {dimension_numbers = #tpu.dot_dimension_numbers<[1], [0], [0], [1], [0, 0, 1, 1], [], []>} : vector<128x32xf32>, vector<32x32xf32>, vector<128x32xf32> -> vector<128x32xf32>
    %c0_17 = arith.constant 0 : index
    %c0_18 = arith.constant 0 : index
    %20 = vector.load %arg7[%c0_17, %c0_18] : memref<1x32xf32, #tpu.memory_space<vmem>>, vector<1x32xf32>
    %21 = vector.broadcast %20 : vector<1x32xf32> to vector<128x32xf32>
    %22 = arith.addf %19, %21 : vector<128x32xf32>
    %23 = vector.shape_cast %22 : vector<128x32xf32> to vector<8x16x32xf32>
    %c0_19 = arith.constant 0 : index
    %c0_20 = arith.constant 0 : index
    %24 = vector.load %arg10[%c0_19, %c0_20] : memref<32x4xf32, #tpu.memory_space<vmem>>, vector<32x4xf32>
    %25 = vector.shape_cast %11 : vector<16x32xf32> to vector<1x16x32xf32>
    %26 = vector.broadcast %25 : vector<1x16x32xf32> to vector<8x16x32xf32>
    %27 = arith.mulf %26, %17 : vector<8x16x32xf32>
    %28 = vector.shape_cast %27 : vector<8x16x32xf32> to vector<128x32xf32>
    %cst_21 = arith.constant dense<0.000000e+00> : vector<128x4xf32>
    %29 = tpu.matmul %28, %24, %cst_21 {dimension_numbers = #tpu.dot_dimension_numbers<[1], [0], [0], [1], [0, 0, 1, 1], [], []>} : vector<128x32xf32>, vector<32x4xf32>, vector<128x4xf32> -> vector<128x4xf32>
    %30 = vector.shape_cast %29 : vector<128x4xf32> to vector<8x16x4xf32>
    %cst_22 = arith.constant dense<0.000000e+00> : vector<16x4xf32>
    %31 = vector.multi_reduction <add>, %30, %cst_22 [0] : vector<8x16x4xf32> to vector<16x4xf32>
    %cst_23 = arith.constant 8.000000e+00 : f32
    %32 = vector.broadcast %cst_23 : f32 to vector<16x4xf32>
    %33 = arith.divf %31, %32 : vector<16x4xf32>
    %cst_24 = arith.constant dense<0xFF800000> : vector<16x4xf32>
    %34 = vector.multi_reduction <maximumf>, %30, %cst_24 [0] : vector<8x16x4xf32> to vector<16x4xf32>
    %35 = arith.maximumf %33, %34 : vector<16x4xf32>
    %36 = arith.subf %33, %35 : vector<16x4xf32>
    %37 = math.exp %36 : vector<16x4xf32>
    %38 = vector.shape_cast %35 : vector<16x4xf32> to vector<1x16x4xf32>
    %39 = vector.broadcast %38 : vector<1x16x4xf32> to vector<8x16x4xf32>
    %40 = arith.subf %30, %39 : vector<8x16x4xf32>
    %41 = math.exp %40 : vector<8x16x4xf32>
    %cst_25 = arith.constant dense<0.000000e+00> : vector<16x4xf32>
    %42 = vector.multi_reduction <add>, %41, %cst_25 [0] : vector<8x16x4xf32> to vector<16x4xf32>
    %43 = arith.addf %37, %42 : vector<16x4xf32>
    %44 = tpu.reciprocal %43 : vector<16x4xf32> -> vector<16x4xf32>
    %cst_26 = arith.constant 1.250000e-01 : f32
    %45 = vector.broadcast %cst_26 : f32 to vector<16x4xf32>
    %46 = arith.mulf %37, %45 : vector<16x4xf32>
    %47 = vector.shape_cast %46 : vector<16x4xf32> to vector<1x16x4xf32>
    %48 = vector.broadcast %47 : vector<1x16x4xf32> to vector<8x16x4xf32>
    %49 = arith.addf %41, %48 : vector<8x16x4xf32>
    %50 = vector.shape_cast %44 : vector<16x4xf32> to vector<1x16x4xf32>
    %51 = vector.broadcast %50 : vector<1x16x4xf32> to vector<8x16x4xf32>
    %52 = arith.mulf %49, %51 : vector<8x16x4xf32>
    %53 = vector.shape_cast %52 : vector<8x16x4xf32> to vector<128x4xf32>
    %c0_27 = arith.constant 0 : index
    %c0_28 = arith.constant 0 : index
    %54 = vector.load %arg11[%c0_27, %c0_28] : memref<4x32xf32, #tpu.memory_space<vmem>>, vector<4x32xf32>
    %cst_29 = arith.constant dense<0.000000e+00> : vector<128x32xf32>
    %55 = tpu.matmul %53, %54, %cst_29 {dimension_numbers = #tpu.dot_dimension_numbers<[1], [0], [0], [1], [0, 0, 1, 1], [], []>} : vector<128x4xf32>, vector<4x32xf32>, vector<128x32xf32> -> vector<128x32xf32>
    %56 = vector.shape_cast %55 : vector<128x32xf32> to vector<8x16x32xf32>
    %57 = arith.mulf %56, %23 : vector<8x16x32xf32>
    %cst_30 = arith.constant dense<0.000000e+00> : vector<16x32xf32>
    %58 = vector.multi_reduction <add>, %57, %cst_30 [0] : vector<8x16x32xf32> to vector<16x32xf32>
    %c0_31 = arith.constant 0 : index
    %c0_32 = arith.constant 0 : index
    %59 = vector.load %arg8[%c0_31, %c0_32] : memref<32x128xf32, #tpu.memory_space<vmem>>, vector<32x128xf32>
    %cst_33 = arith.constant dense<0.000000e+00> : vector<16x128xf32>
    %60 = tpu.matmul %58, %59, %cst_33 {dimension_numbers = #tpu.dot_dimension_numbers<[1], [0], [0], [1], [0, 0, 1, 1], [], []>} : vector<16x32xf32>, vector<32x128xf32>, vector<16x128xf32> -> vector<16x128xf32>
    %c0_34 = arith.constant 0 : index
    %c0_35 = arith.constant 0 : index
    %61 = vector.load %arg9[%c0_34, %c0_35] : memref<1x128xf32, #tpu.memory_space<vmem>>, vector<1x128xf32>
    %62 = vector.broadcast %61 : vector<1x128xf32> to vector<16x128xf32>
    %63 = arith.addf %60, %62 : vector<16x128xf32>
    %c0_36 = arith.constant 0 : index
    %c0_37 = arith.constant 0 : index
    %64 = vector.load %arg12[%c0_36, %c0_37] : memref<16x128xf32, #tpu.memory_space<vmem>>, vector<16x128xf32>
    tpu.vector_store %arg12[%c0_36, %c0_37], %63 {strides = array<i32>} : memref<16x128xf32, #tpu.memory_space<vmem>>, vector<16x128xf32>,
    return
  }
  func.func @transform_0(%arg0: i32) -> (i32, i32, i32) {
    %c0_i32 = arith.constant 0 : i32
    %c0_i32_0 = arith.constant 0 : i32
    %c0_i32_1 = arith.constant 0 : i32
    return %c0_i32, %arg0, %c0_i32_0 : i32, i32, i32
  }
  func.func @transform_1(%arg0: i32) -> (i32, i32) {
    %c0_i32 = arith.constant 0 : i32
    %c0_i32_0 = arith.constant 0 : i32
    %c0_i32_1 = arith.constant 0 : i32
    return %c0_i32, %c0_i32_0 : i32, i32
  }
  func.func @transform_2(%arg0: i32) -> (i32, i32) {
    %c0_i32 = arith.constant 0 : i32
    %c0_i32_0 = arith.constant 0 : i32
    %c0_i32_1 = arith.constant 0 : i32
    return %c0_i32, %c0_i32_0 : i32, i32
  }
  func.func @transform_3(%arg0: i32) -> (i32, i32) {
    %c0_i32 = arith.constant 0 : i32
    %c0_i32_0 = arith.constant 0 : i32
    %c0_i32_1 = arith.constant 0 : i32
    return %c0_i32, %c0_i32_0 : i32, i32
  }
  func.func @transform_4(%arg0: i32) -> (i32, i32) {
    %c0_i32 = arith.constant 0 : i32
    %c0_i32_0 = arith.constant 0 : i32
    %c0_i32_1 = arith.constant 0 : i32
    return %c0_i32, %c0_i32_0 : i32, i32
  }
  func.func @transform_5(%arg0: i32) -> (i32, i32) {
    %c0_i32 = arith.constant 0 : i32
    %c0_i32_0 = arith.constant 0 : i32
    %c0_i32_1 = arith.constant 0 : i32
    return %c0_i32, %c0_i32_0 : i32, i32
  }
  func.func @transform_6(%arg0: i32) -> (i32, i32) {
    %c0_i32 = arith.constant 0 : i32
    %c0_i32_0 = arith.constant 0 : i32
    %c0_i32_1 = arith.constant 0 : i32
    return %c0_i32, %c0_i32_0 : i32, i32
  }
  func.func @transform_7(%arg0: i32) -> (i32, i32) {
    %c0_i32 = arith.constant 0 : i32
    %c0_i32_0 = arith.constant 0 : i32
    %c0_i32_1 = arith.constant 0 : i32
    return %c0_i32, %c0_i32_0 : i32, i32
  }
  func.func @transform_8(%arg0: i32) -> (i32, i32) {
    %c0_i32 = arith.constant 0 : i32
    %c0_i32_0 = arith.constant 0 : i32
    %c0_i32_1 = arith.constant 0 : i32
    return %c0_i32, %c0_i32_0 : i32, i32
  }
  func.func @transform_9(%arg0: i32) -> (i32, i32) {
    %c0_i32 = arith.constant 0 : i32
    %c0_i32_0 = arith.constant 0 : i32
    %c0_i32_1 = arith.constant 0 : i32
    return %c0_i32, %c0_i32_0 : i32, i32
  }
  func.func @transform_10(%arg0: i32) -> (i32, i32) {
    %c0_i32 = arith.constant 0 : i32
    %c0_i32_0 = arith.constant 0 : i32
    %c0_i32_1 = arith.constant 0 : i32
    return %c0_i32, %c0_i32_0 : i32, i32
  }
  func.func @transform_11(%arg0: i32) -> (i32, i32) {
    %c0_i32 = arith.constant 0 : i32
    %c0_i32_0 = arith.constant 0 : i32
    return %arg0, %c0_i32 : i32, i32
  }
}

module attributes {stable_mosaic.version = 11 : i64} {
  func.func @_attn_pool_kernel(%arg0: i32, %arg1: memref<8x16x32xf32, #tpu.memory_space<vmem>>, %arg2: memref<32x32xf32, #tpu.memory_space<vmem>>, %arg3: memref<1x32xf32, #tpu.memory_space<vmem>>, %arg4: memref<32x32xf32, #tpu.memory_space<vmem>>, %arg5: memref<1x32xf32, #tpu.memory_space<vmem>>, %arg6: memref<32x32xf32, #tpu.memory_space<vmem>>, %arg7: memref<1x32xf32, #tpu.memory_space<vmem>>, %arg8: memref<32x128xf32, #tpu.memory_space<vmem>>, %arg9: memref<1x128xf32, #tpu.memory_space<vmem>>, %arg10: memref<32x4xf32, #tpu.memory_space<vmem>>, %arg11: memref<4x32xf32, #tpu.memory_space<vmem>>, %arg12: memref<16x128xf32, #tpu.memory_space<vmem>>) attributes {dimension_semantics = [#tpu.dimension_semantics<parallel>], iteration_bounds = array<i64: 1>, scalar_prefetch = 0 : i64, scratch_operands = 0 : i64, tpu.core_type = #tpu.core_type<tc>, window_params = [{transform_indices = @transform_0, window_bounds = array<i64: 8, 16, 32>}, {pipeline_mode = #tpu.pipeline_mode<synchronous>, transform_indices = @transform_1, window_bounds = array<i64: 32, 32>}, {pipeline_mode = #tpu.pipeline_mode<synchronous>, transform_indices = @transform_2, window_bounds = array<i64: 1, 32>}, {pipeline_mode = #tpu.pipeline_mode<synchronous>, transform_indices = @transform_3, window_bounds = array<i64: 32, 32>}, {pipeline_mode = #tpu.pipeline_mode<synchronous>, transform_indices = @transform_4, window_bounds = array<i64: 1, 32>}, {pipeline_mode = #tpu.pipeline_mode<synchronous>, transform_indices = @transform_5, window_bounds = array<i64: 32, 32>}, {pipeline_mode = #tpu.pipeline_mode<synchronous>, transform_indices = @transform_6, window_bounds = array<i64: 1, 32>}, {pipeline_mode = #tpu.pipeline_mode<synchronous>, transform_indices = @transform_7, window_bounds = array<i64: 32, 128>}, {pipeline_mode = #tpu.pipeline_mode<synchronous>, transform_indices = @transform_8, window_bounds = array<i64: 1, 128>}, {pipeline_mode = #tpu.pipeline_mode<synchronous>, transform_indices = @transform_9, window_bounds = array<i64: 32, 4>}, {pipeline_mode = #tpu.pipeline_mode<synchronous>, transform_indices = @transform_10, window_bounds = array<i64: 4, 32>}, {transform_indices = @transform_11, window_bounds = array<i64: 16, 128>}]} {
    %c0 = arith.constant 0 : index
    %c0_0 = arith.constant 0 : index
    %c0_1 = arith.constant 0 : index
    %0 = vector.load %arg1[%c0, %c0_0, %c0_1] : memref<8x16x32xf32, #tpu.memory_space<vmem>>, vector<8x16x32xf32>
    %1 = vector.shape_cast %0 : vector<8x16x32xf32> to vector<128x32xf32>
    %cst = arith.constant dense<0.000000e+00> : vector<16x32xf32>
    %2 = vector.multi_reduction <add>, %0, %cst [0] : vector<8x16x32xf32> to vector<16x32xf32>
    %cst_2 = arith.constant 8.000000e+00 : f32
    %3 = vector.broadcast %cst_2 : f32 to vector<16x32xf32>
    %4 = arith.divf %2, %3 : vector<16x32xf32>
    %c0_3 = arith.constant 0 : index
    %c0_4 = arith.constant 0 : index
    %5 = vector.load %arg2[%c0_3, %c0_4] : memref<32x32xf32, #tpu.memory_space<vmem>>, vector<32x32xf32>
    %cst_5 = arith.constant dense<0.000000e+00> : vector<16x32xf32>
    %6 = tpu.matmul %4, %5, %cst_5 {dimension_numbers = #tpu.dot_dimension_numbers<[1], [0], [0], [1], [0, 0, 1, 1], [], []>} : vector<16x32xf32>, vector<32x32xf32>, vector<16x32xf32> -> vector<16x32xf32>
    %c0_6 = arith.constant 0 : index
    %c0_7 = arith.constant 0 : index
    %7 = vector.load %arg3[%c0_6, %c0_7] : memref<1x32xf32, #tpu.memory_space<vmem>>, vector<1x32xf32>
    %8 = vector.broadcast %7 : vector<1x32xf32> to vector<16x32xf32>
    %9 = arith.addf %6, %8 : vector<16x32xf32>
    %cst_8 = arith.constant 0.353553385 : f32
    %10 = vector.broadcast %cst_8 : f32 to vector<16x32xf32>
    %11 = arith.mulf %9, %10 : vector<16x32xf32>
    %c0_9 = arith.constant 0 : index
    %c0_10 = arith.constant 0 : index
    %12 = vector.load %arg4[%c0_9, %c0_10] : memref<32x32xf32, #tpu.memory_space<vmem>>, vector<32x32xf32>
    %cst_11 = arith.constant dense<0.000000e+00> : vector<128x32xf32>
    %13 = tpu.matmul %1, %12, %cst_11 {dimension_numbers = #tpu.dot_dimension_numbers<[1], [0], [0], [1], [0, 0, 1, 1], [], []>} : vector<128x32xf32>, vector<32x32xf32>, vector<128x32xf32> -> vector<128x32xf32>
    %c0_12 = arith.constant 0 : index
    %c0_13 = arith.constant 0 : index
    %14 = vector.load %arg5[%c0_12, %c0_13] : memref<1x32xf32, #tpu.memory_space<vmem>>, vector<1x32xf32>
    %15 = vector.broadcast %14 : vector<1x32xf32> to vector<128x32xf32>
    %16 = arith.addf %13, %15 : vector<128x32xf32>
    %17 = vector.shape_cast %16 : vector<128x32xf32> to vector<8x16x32xf32>
    %c0_14 = arith.constant 0 : index
    %c0_15 = arith.constant 0 : index
    %18 = vector.load %arg6[%c0_14, %c0_15] : memref<32x32xf32, #tpu.memory_space<vmem>>, vector<32x32xf32>
    %cst_16 = arith.constant dense<0.000000e+00> : vector<128x32xf32>
    %19 = tpu.matmul %1, %18, %cst_16 {dimension_numbers = #tpu.dot_dimension_numbers<[1], [0], [0], [1], [0, 0, 1, 1], [], []>} : vector<128x32xf32>, vector<32x32xf32>, vector<128x32xf32> -> vector<128x32xf32>
    %c0_17 = arith.constant 0 : index
    %c0_18 = arith.constant 0 : index
    %20 = vector.load %arg7[%c0_17, %c0_18] : memref<1x32xf32, #tpu.memory_space<vmem>>, vector<1x32xf32>
    %21 = vector.broadcast %20 : vector<1x32xf32> to vector<128x32xf32>
    %22 = arith.addf %19, %21 : vector<128x32xf32>
    %23 = vector.shape_cast %22 : vector<128x32xf32> to vector<8x16x32xf32>
    %c0_19 = arith.constant 0 : index
    %c0_20 = arith.constant 0 : index
    %24 = vector.load %arg10[%c0_19, %c0_20] : memref<32x4xf32, #tpu.memory_space<vmem>>, vector<32x4xf32>
    %25 = vector.shape_cast %11 : vector<16x32xf32> to vector<1x16x32xf32>
    %26 = vector.broadcast %25 : vector<1x16x32xf32> to vector<8x16x32xf32>
    %27 = arith.mulf %26, %17 : vector<8x16x32xf32>
    %28 = vector.shape_cast %27 : vector<8x16x32xf32> to vector<128x32xf32>
    %cst_21 = arith.constant dense<0.000000e+00> : vector<128x4xf32>
    %29 = tpu.matmul %28, %24, %cst_21 {dimension_numbers = #tpu.dot_dimension_numbers<[1], [0], [0], [1], [0, 0, 1, 1], [], []>} : vector<128x32xf32>, vector<32x4xf32>, vector<128x4xf32> -> vector<128x4xf32>
    %30 = vector.shape_cast %29 : vector<128x4xf32> to vector<8x16x4xf32>
    %cst_22 = arith.constant dense<0.000000e+00> : vector<16x4xf32>
    %31 = vector.multi_reduction <add>, %30, %cst_22 [0] : vector<8x16x4xf32> to vector<16x4xf32>
    %cst_23 = arith.constant 8.000000e+00 : f32
    %32 = vector.broadcast %cst_23 : f32 to vector<16x4xf32>
    %33 = arith.divf %31, %32 : vector<16x4xf32>
    %cst_24 = arith.constant dense<0xFF800000> : vector<16x4xf32>
    %34 = vector.multi_reduction <maximumf>, %30, %cst_24 [0] : vector<8x16x4xf32> to vector<16x4xf32>
    %35 = arith.maximumf %33, %34 : vector<16x4xf32>
    %36 = arith.subf %33, %35 : vector<16x4xf32>
    %37 = math.exp %36 : vector<16x4xf32>
    %38 = vector.shape_cast %35 : vector<16x4xf32> to vector<1x16x4xf32>
    %39 = vector.broadcast %38 : vector<1x16x4xf32> to vector<8x16x4xf32>
    %40 = arith.subf %30, %39 : vector<8x16x4xf32>
    %41 = math.exp %40 : vector<8x16x4xf32>
    %cst_25 = arith.constant dense<0.000000e+00> : vector<16x4xf32>
    %42 = vector.multi_reduction <add>, %41, %cst_25 [0] : vector<8x16x4xf32> to vector<16x4xf32>
    %43 = arith.addf %37, %42 : vector<16x4xf32>
    %44 = tpu.reciprocal %43 : vector<16x4xf32> -> vector<16x4xf32>
    %cst_26 = arith.constant 1.250000e-01 : f32
    %45 = vector.broadcast %cst_26 : f32 to vector<16x4xf32>
    %46 = arith.mulf %37, %45 : vector<16x4xf32>
    %47 = vector.shape_cast %46 : vector<16x4xf32> to vector<1x16x4xf32>
    %48 = vector.broadcast %47 : vector<1x16x4xf32> to vector<8x16x4xf32>
    %49 = arith.addf %41, %48 : vector<8x16x4xf32>
    %50 = vector.shape_cast %44 : vector<16x4xf32> to vector<1x16x4xf32>
    %51 = vector.broadcast %50 : vector<1x16x4xf32> to vector<8x16x4xf32>
    %52 = arith.mulf %49, %51 : vector<8x16x4xf32>
    %53 = vector.shape_cast %52 : vector<8x16x4xf32> to vector<128x4xf32>
    %c0_27 = arith.constant 0 : index
    %c0_28 = arith.constant 0 : index
    %54 = vector.load %arg11[%c0_27, %c0_28] : memref<4x32xf32, #tpu.memory_space<vmem>>, vector<4x32xf32>
    %cst_29 = arith.constant dense<0.000000e+00> : vector<128x32xf32>
    %55 = tpu.matmul %53, %54, %cst_29 {dimension_numbers = #tpu.dot_dimension_numbers<[1], [0], [0], [1], [0, 0, 1, 1], [], []>} : vector<128x4xf32>, vector<4x32xf32>, vector<128x32xf32> -> vector<128x32xf32>
    %56 = vector.shape_cast %55 : vector<128x32xf32> to vector<8x16x32xf32>
    %57 = arith.mulf %56, %23 : vector<8x16x32xf32>
    %cst_30 = arith.constant dense<0.000000e+00> : vector<16x32xf32>
    %58 = vector.multi_reduction <add>, %57, %cst_30 [0] : vector<8x16x32xf32> to vector<16x32xf32>
    %c0_31 = arith.constant 0 : index
    %c0_32 = arith.constant 0 : index
    %59 = vector.load %arg8[%c0_31, %c0_32] : memref<32x128xf32, #tpu.memory_space<vmem>>, vector<32x128xf32>
    %cst_33 = arith.constant dense<0.000000e+00> : vector<16x128xf32>
    %60 = tpu.matmul %58, %59, %cst_33 {dimension_numbers = #tpu.dot_dimension_numbers<[1], [0], [0], [1], [0, 0, 1, 1], [], []>} : vector<16x32xf32>, vector<32x128xf32>, vector<16x128xf32> -> vector<16x128xf32>
    %c0_34 = arith.constant 0 : index
    %c0_35 = arith.constant 0 : index
    %61 = vector.load %arg9[%c0_34, %c0_35] : memref<1x128xf32, #tpu.memory_space<vmem>>, vector<1x128xf32>
    %62 = vector.broadcast %61 : vector<1x128xf32> to vector<16x128xf32>
    %63 = arith.addf %60, %62 : vector<16x128xf32>
    %c0_36 = arith.constant 0 : index
    %c0_37 = arith.constant 0 : index
    %64 = vector.load %arg12[%c0_36, %c0_37] : memref<16x128xf32, #tpu.memory_space<vmem>>, vector<16x128xf32>
    tpu.vector_store %arg12[%c0_36, %c0_37], %63 {strides = array<i32>} : memref<16x128xf32, #tpu.memory_space<vmem>>, vector<16x128xf32>,
    return
  }
  func.func @transform_0(%arg0: i32) -> (i32, i32, i32) {
    %c0_i32 = arith.constant 0 : i32
    %c0_i32_0 = arith.constant 0 : i32
    %c0_i32_1 = arith.constant 0 : i32
    return %c0_i32, %arg0, %c0_i32_0 : i32, i32, i32
  }
  func.func @transform_1(%arg0: i32) -> (i32, i32) {
    %c0_i32 = arith.constant 0 : i32
    %c0_i32_0 = arith.constant 0 : i32
    %c0_i32_1 = arith.constant 0 : i32
    return %c0_i32, %c0_i32_0 : i32, i32
  }
  func.func @transform_2(%arg0: i32) -> (i32, i32) {
    %c0_i32 = arith.constant 0 : i32
    %c0_i32_0 = arith.constant 0 : i32
    %c0_i32_1 = arith.constant 0 : i32
    return %c0_i32, %c0_i32_0 : i32, i32
  }
  func.func @transform_3(%arg0: i32) -> (i32, i32) {
    %c0_i32 = arith.constant 0 : i32
    %c0_i32_0 = arith.constant 0 : i32
    %c0_i32_1 = arith.constant 0 : i32
    return %c0_i32, %c0_i32_0 : i32, i32
  }
  func.func @transform_4(%arg0: i32) -> (i32, i32) {
    %c0_i32 = arith.constant 0 : i32
    %c0_i32_0 = arith.constant 0 : i32
    %c0_i32_1 = arith.constant 0 : i32
    return %c0_i32, %c0_i32_0 : i32, i32
  }
  func.func @transform_5(%arg0: i32) -> (i32, i32) {
    %c0_i32 = arith.constant 0 : i32
    %c0_i32_0 = arith.constant 0 : i32
    %c0_i32_1 = arith.constant 0 : i32
    return %c0_i32, %c0_i32_0 : i32, i32
  }
  func.func @transform_6(%arg0: i32) -> (i32, i32) {
    %c0_i32 = arith.constant 0 : i32
    %c0_i32_0 = arith.constant 0 : i32
    %c0_i32_1 = arith.constant 0 : i32
    return %c0_i32, %c0_i32_0 : i32, i32
  }
  func.func @transform_7(%arg0: i32) -> (i32, i32) {
    %c0_i32 = arith.constant 0 : i32
    %c0_i32_0 = arith.constant 0 : i32
    %c0_i32_1 = arith.constant 0 : i32
    return %c0_i32, %c0_i32_0 : i32, i32
  }
  func.func @transform_8(%arg0: i32) -> (i32, i32) {
    %c0_i32 = arith.constant 0 : i32
    %c0_i32_0 = arith.constant 0 : i32
    %c0_i32_1 = arith.constant 0 : i32
    return %c0_i32, %c0_i32_0 : i32, i32
  }
  func.func @transform_9(%arg0: i32) -> (i32, i32) {
    %c0_i32 = arith.constant 0 : i32
    %c0_i32_0 = arith.constant 0 : i32
    %c0_i32_1 = arith.constant 0 : i32
    return %c0_i32, %c0_i32_0 : i32, i32
  }
  func.func @transform_10(%arg0: i32) -> (i32, i32) {
    %c0_i32 = arith.constant 0 : i32
    %c0_i32_0 = arith.constant 0 : i32
    %c0_i32_1 = arith.constant 0 : i32
    return %c0_i32, %c0_i32_0 : i32, i32
  }
  func.func @transform_11(%arg0: i32) -> (i32, i32) {
    %c0_i32 = arith.constant 0 : i32
    %c0_i32_0 = arith.constant 0 : i32
    return %arg0, %c0_i32 : i32, i32
  }
}

</mosaic_0001>

<bundles_post_ra>
// kernel: tpu_custom_call.1
= control target key start
LH: loop header
LB: loop body
LE: loop exit
PB: predicated region body
PF: predicated region fallthrough
CT: control target
= control target key end

     0   :  { %16 = vsyncpa [#allocation3], 0  ;;  %s2293_s0 = inlined_call_operand.hbm [shape: f32[8,16,32], index: 0, kind: input, shape index: {}]   ;;  %s2294_s1 = inlined_call_operand.vmem [shape: f32[32,32], index: 1, kind: input, shape index: {}]   ;;  %s2295_s2 = inlined_call_operand.vmem [shape: f32[1,32], index: 2, kind: input, shape index: {}]   ;;  %s2296_s3 = inlined_call_operand.hbm [shape: f32[32,32], index: 3, kind: input, shape index: {}]   ;;  %s2297_s4 = inlined_call_operand.vmem [shape: f32[1,32], index: 4, kind: input, shape index: {}]   ;;  %s2298_s5 = inlined_call_operand.hbm [shape: f32[32,32], index: 5, kind: input, shape index: {}]   ;;  %s2299_s6 = inlined_call_operand.vmem [shape: f32[1,32], index: 6, kind: input, shape index: {}]   ;;  %s2300_s7 = inlined_call_operand.hbm [shape: f32[32,128], index: 7, kind: input, shape index: {}]   ;;  %s2301_s8 = inlined_call_operand.vmem [shape: f32[1,128], index: 8, kind: input, shape index: {}]   ;;  %s2302_s9 = inlined_call_operand.vmem [shape: f32[32,4], index: 9, kind: input, shape index: {}]   ;;  %s2303_s10 = inlined_call_operand.vmem [shape: f32[4,32], index: 10, kind: input, shape index: {}]   ;;  %s2304_s11 = inlined_call_operand.hbm [shape: f32[16,128], index: 11, kind: output, shape index: {}]  }
   0x1   :  { %17 = vsyncpa [#allocation6], 0 }
   0x2   :  { %18 = vsyncpa [#allocation9], 0 }
   0x3   :  { %19 = vsyncpa [#allocation4], 0  ;;  %s1816_s17 = smov [#allocation5]   ;;  %s1817_s19 = smov [#allocation2]  }
   0x4   :  { %s41_s18 = sshll.u32 %s1816_s17, 4  ;;  %s25_s20 = sshll.u32 %s1817_s19, 4  ;;  %s42_s18 = int_to_ptr.vmem [resolvable:$true] %s41_s18  ;;  %s26_s20 = int_to_ptr.vmem [resolvable:$true] %s25_s20 }
   0x5   :  { %s1716_s21 = scalar_lea.vmem %s42_s18, 512  ;;  %p1721_p1 = scmp.lt.s32.totalorder %s42_s18, %s42_s18 }
   0x6   :  { %p1717_p0 = scmp.ne.s32.totalorder %s42_s18, %s1716_s21  ;;  %p1722_p2 = scmp.lt.s32.totalorder %s1716_s21, %s1716_s21 }
   0x8   :  { %p1723_p3 = por %p1722_p2, %p1721_p1 }
   0xa   :  { %p1724_p4 = pnand %p1723_p3, %p1717_p0 }
   0xc   :  { %1727 = shalt.err (!%p1724_p4)
}
   0xd   :  { %s1818_s22 = smov 128   ;;  %s1819_s23 = smov 8  }
   0xe   :  { %47 = dma.hbm_to_vmem [thread:$0]  %s2296_s3, 512, %s42_s18, [#allocation6], %s1818_s22, %s1818_s22, %s1819_s23  }
   0xf   :  { %s1736_s26 = scalar_lea.vmem %s26_s20, 2048  ;;  %p1741_p6 = scmp.lt.s32.totalorder %s26_s20, %s26_s20 }
  0x10   :  { %p1737_p5 = scmp.ne.s32.totalorder %s26_s20, %s1736_s26  ;;  %p1742_p7 = scmp.lt.s32.totalorder %s1736_s26, %s1736_s26 }
  0x12   :  { %p1743_p8 = por %p1742_p7, %p1741_p6 }
  0x14   :  { %p1744_p9 = pnand %p1743_p8, %p1737_p5 }
  0x16   :  { %1747 = shalt.err (!%p1744_p9)
}
  0x17   :  { %31 = dma.hbm_to_vmem [thread:$0]  %s2293_s0, 2048, %s26_s20, [#allocation3], %s1818_s22, %s1818_s22, %s1819_s23  }
  0x18   :  { %s1820_s29 = smov [#allocation7]   ;;  %s1821_s12 = smov [#allocation8]  }
  0x19   :  { %s55_s30 = sshll.u32 %s1820_s29, 4  ;;  %s69_s13 = sshll.u32 %s1821_s12, 4  ;;  %s56_s30 = int_to_ptr.vmem [resolvable:$true] %s55_s30  ;;  %s70_s13 = int_to_ptr.vmem [resolvable:$true] %s69_s13 }
  0x1a   :  { %s1756_s3 = scalar_lea.vmem %s56_s30, 512  ;;  %p1761_p11 = scmp.lt.s32.totalorder %s56_s30, %s56_s30 }
  0x1b   :  { %p1757_p10 = scmp.ne.s32.totalorder %s56_s30, %s1756_s3  ;;  %p1762_p12 = scmp.lt.s32.totalorder %s1756_s3, %s1756_s3 }
  0x1d   :  { %p1763_p13 = por %p1762_p12, %p1761_p11 }
  0x1f   :  { %p1764_p0 = pnand %p1763_p13, %p1757_p10 }
  0x21   :  { %1767 = shalt.err (!%p1764_p0)
}
  0x22   :  { %61 = dma.hbm_to_vmem [thread:$0]  %s2298_s5, 512, %s56_s30, [#allocation6], %s1818_s22, %s1818_s22, %s1819_s23  }
  0x23   :  { %s1776_s0 = scalar_lea.vmem %s70_s13, 512  ;;  %p1781_p2 = scmp.lt.s32.totalorder %s70_s13, %s70_s13 }
  0x24   :  { %p1777_p1 = scmp.ne.s32.totalorder %s70_s13, %s1776_s0  ;;  %p1782_p3 = scmp.lt.s32.totalorder %s1776_s0, %s1776_s0 }
  0x26   :  { %p1783_p4 = por %p1782_p3, %p1781_p2 }
  0x28   :  { %p1784_p5 = pnand %p1783_p4, %p1777_p1 }
  0x2a   :  { %1787 = shalt.err (!%p1784_p5)
}
  0x2b   :  { %75 = dma.hbm_to_vmem [thread:$0]  %s2300_s7, 512, %s70_s13, [#allocation9], %s1818_s22, %s1818_s22, %s1819_s23  }
  0x2c   :  { %1808 = dma.done.wait [#allocation3], 2048  }
  0x2d   :  { %1809 = vsyncadd [#allocation3], 4294965248 }
  0x2e   :  { %1810 = dma.done.wait [#allocation6], 1024  }
  0x2f   :  { %1811 = vsyncadd [#allocation6], 4294966272 }
  0x30   :  { %1812 = dma.done.wait [#allocation9], 512  }
  0x31   :  { %1813 = vsyncadd [#allocation9], 4294966784  ;;  %vm110_vm0 = vcmask 261120   ;;  %v241_v0 = vld [vmem:[#allocation5 + $0x18] sm:$0xff]  ;;  %v240_v1 = vld [vmem:[#allocation5 + $0x10] sm:$0xff]  ;;  %vm1047_vm1 = vcmask 1043456  }
  0x32   :  { %1528 = vmatprep.subr.mxu1 %v241_v0  ;;  %v239_v2 = vld [vmem:[#allocation5 + $0x8] sm:$0xff]  ;;  %v1907_v3 = vld [vmem:[#allocation2] sm:$0xff]  ;;  %v147_v7 = vld [vmem:[%s2294_s1 + $0x18] sm:$0xff]  ;;  %vm811_vm2 = vcmask 31744   ;;  %s1822_s17 = smov [#allocation10]  }
  0x33   :  { %v1909_v4 = vld [vmem:[#allocation2 + $0x8] sm:$0xff]  ;;  %1529 = vmatpush3.msra.mxu1 %v241_v0  ;;  %v111_v5 = vsel %vm110_vm0, %v1907_v3, 0.0  ;;  %1536 = vmatprep.mubr.msk.f32.mxu1 %vm110_vm0, %v1907_v3  ;;  %v1920_v8 = vld [vmem:[#allocation2 + $0x10] sm:$0xff]  ;;  %v238_v10 = vld [vmem:[#allocation5] sm:$0xff]  ;;  %s1341_s5 = sshll.u32 %s1822_s17, 4  ;;  %s1342_s5 = int_to_ptr.vmem [resolvable:$true] %s1341_s5 }
  0x34   :  { %v126_v6 = vsel %vm110_vm0, %v1909_v4, 0.0  ;;  %v146_v9 = vld [vmem:[%s2294_s1 + $0x10] sm:$0xff]  ;;  %1530 = vmatprep.subr.mxu1 %v240_v1  ;;  %1517 = vmatprep.subr.mxu0 %v147_v7  ;;  %v112_v11 = vsel %vm110_vm0, %v1920_v8, 0.0  ;;  %v1927_v12 = vld [vmem:[#allocation2 + $0x18] sm:$0xff]  ;;  %v1929_v13 = vld [vmem:[#allocation2 + $0x20] sm:$0xff]  ;;  %s1788_s7 = scalar_lea.vmem %s1342_s5, 256  ;;  %p1793_p7 = scmp.lt.s32.totalorder %s1342_s5, %s1342_s5 }
  0x35   :  { %1531 = vmatpush3.msra.mxu1 %v240_v1  ;;  %1518 = vmatpush3.msra.mxu0 %v147_v7  ;;  %v113_v14 = vadd.f32 %v112_v11, %v111_v5  ;;  %v127_v15 = vsel %vm110_vm0, %v1927_v12, 0.0  ;;  %v145_v16 = vld [vmem:[%s2294_s1 + $0x8] sm:$0xff]  ;;  %v1936_v17 = vld [vmem:[#allocation2 + $0x30] sm:$0xff]  ;;  %v114_v18 = vsel %vm110_vm0, %v1929_v13, 0.0  ;;  %v1944_v22 = vld [vmem:[#allocation2 + $0x38] sm:$0xff]  ;;  %p1789_p6 = scmp.ne.s32.totalorder %s1342_s5, %s1788_s7  ;;  %p1794_p8 = scmp.lt.s32.totalorder %s1788_s7, %s1788_s7 }
  0x36   :  { %v1940_v19 = vld [vmem:[#allocation2 + $0x28] sm:$0xff]  ;;  %1532 = vmatprep.subr.mxu1 %v239_v2  ;;  %1519 = vmatprep.subr.mxu0 %v146_v9  ;;  %v128_v20 = vadd.f32 %v127_v15, %v126_v6  ;;  %v116_v21 = vsel %vm110_vm0, %v1936_v17, 0.0  ;;  %v1950_v25 = vld [vmem:[#allocation2 + $0x40] sm:$0xff]  ;;  %v131_v28 = vsel %vm110_vm0, %v1944_v22, 0.0  ;;  %v1957_v29 = vld [vmem:[#allocation2 + $0x50] sm:$0xff] }
  0x37   :  { %v1946_v23 = vld [vmem:[#allocation2 + $0x48] sm:$0xff]  ;;  %v129_v24 = vsel %vm110_vm0, %v1940_v19, 0.0  ;;  %1533 = vmatpush3.msra.mxu1 %v239_v2  ;;  %1520 = vmatpush3.msra.mxu0 %v146_v9  ;;  %v115_v26 = vadd.f32 %v114_v18, %v113_v14  ;;  %v144_v27 = vld [vmem:[%s2294_s1] sm:$0xff]  ;;  %v118_v31 = vsel %vm110_vm0, %v1950_v25, 0.0  ;;  %v1961_v32 = vld [vmem:[#allocation2 + $0x58] sm:$0xff]  ;;  %v120_v38 = vsel %vm110_vm0, %v1957_v29, 0.0  ;;  %p1795_p9 = por %p1794_p8, %p1793_p7 }
  0x38   :  { %1534 = vmatprep.subr.mxu1 %v238_v10  ;;  %1521 = vmatprep.subr.mxu0 %v145_v16  ;;  %v130_v30 = vadd.f32 %v129_v24, %v128_v20  ;;  %v133_v34 = vsel %vm110_vm0, %v1946_v23, 0.0  ;;  %v1965_v35 = vld [vmem:[#allocation2 + $0x60] sm:$0xff]  ;;  %v601_v36 = vld [vmem:[%s2302_s9 + $0x18] sm:$0xff]  ;;  %v1974_v39 = vld [vmem:[#allocation2 + $0x68] sm:$0xff]  ;;  %v135_v42 = vsel %vm110_vm0, %v1961_v32, 0.0 }
  0x39   :  { %1535 = vmatpush3.msra.mxu1 %v238_v10  ;;  %1522 = vmatpush3.msra.mxu0 %v145_v16  ;;  %v117_v33 = vadd.f32 %v116_v21, %v115_v26  ;;  %v1978_v40 = vld [vmem:[#allocation2 + $0x70] sm:$0xff]  ;;  %v122_v45 = vsel %vm110_vm0, %v1965_v35, 0.0  ;;  %v1987_v46 = vld [vmem:[#allocation2 + $0x78] sm:$0xff]  ;;  %v137_v48 = vsel %vm110_vm0, %v1974_v39, 0.0  ;;  %v599_v58 = vld [vmem:[%s2302_s9 + $0x8] sm:$0xff]  ;;  %p1796_p10 = pnand %p1795_p9, %p1789_p6 }
  0x3a   :  { %1537 = vmatmul.mubr.msk.f32.vlgmr.msra.gmra.mxu1 %vm110_vm0, %v1909_v4  ;;  %1523 = vmatprep.subr.mxu0 %v144_v27  ;;  %v132_v37 = vadd.f32 %v131_v28, %v130_v30  ;;  %v600_v43 = vld [vmem:[%s2302_s9 + $0x10] sm:$0xff]  ;;  %v124_v49 = vsel %vm110_vm0, %v1978_v40, 0.0  ;;  %v139_v52 = vsel %vm110_vm0, %v1987_v46, 0.0  ;;  %v598_v59 = vld [vmem:[%s2302_s9] sm:$0xff] }
  0x3b   :  { %1539 = vmatprep.mubr.msk.f32.mxu1 %vm110_vm0, %v1920_v8  ;;  %1524 = vmatpush3.msra.mxu0 %v144_v27  ;;  %v119_v41 = vadd.f32 %v118_v31, %v117_v33  ;;  %v1355_v1 = vld [vmem:[%s2295_s2] ss:$0 sm:$0xff] }
  0x3c   :  { %v134_v44 = vadd.f32 %v133_v34, %v132_v37  ;;  %1592 = vmatprep.subr.mxu1 %v601_v36  ;;  %v1358_v6 = vld [vmem:[%s2297_s4] ss:$0 sm:$0xff] }
  0x3d   :  { %v121_v47 = vadd.f32 %v120_v38, %v119_v41  ;;  %1593 = vmatpush3.msra.mxu1 %v601_v36 }
  0x3e   :  { %1540 = vmatmul.mubr.msk.f32.gmra.mxu1 %vm110_vm0, %v1927_v12  ;;  %v136_v50 = vadd.f32 %v135_v42, %v134_v44  ;;  %1594 = vmatprep.subr.mxu1 %v600_v43 }
  0x3f   :  { %1542 = vmatprep.mubr.msk.f32.mxu1 %vm110_vm0, %v1929_v13  ;;  %v123_v51 = vadd.f32 %v122_v45, %v121_v47  ;;  %1595 = vmatpush3.msra.mxu1 %v600_v43 }
  0x40   :  { %v138_v53 = vadd.f32 %v137_v48, %v136_v50  ;;  %1596 = vmatprep.subr.mxu1 %v599_v58 }
  0x41   :  { %v125_v54 = vadd.f32 %v124_v49, %v123_v51  ;;  %1597 = vmatpush3.msra.mxu1 %v599_v58 }
  0x42   :  { %1543 = vmatmul.mubr.msk.f32.gmra.mxu1 %vm110_vm0, %v1940_v19  ;;  %v140_v55 = vadd.f32 %v139_v52, %v138_v53  ;;  %1598 = vmatprep.subr.mxu1 %v598_v59 }
  0x43   :  { %v142_v56 = vmul.f32 0.125, %v125_v54  ;;  %1545 = vmatprep.mubr.msk.f32.mxu1 %vm110_vm0, %v1936_v17  ;;  %1599 = vmatpush3.msra.mxu1 %v598_v59 }
  0x44   :  { %v143_v57 = vmul.f32 0.125, %v140_v55 }
  0x45   :  { %1525 = vmatprep.mubr.msk.f32.mxu0 %vm110_vm0, %v142_v56 }
  0x46   :  { %1526 = vmatmul.mubr.msk.f32.vlgmr.msra.gmra.mxu0 %vm110_vm0, %v143_v57  ;;  %1546 = vmatmul.mubr.msk.f32.gmra.mxu1 %vm110_vm0, %v1944_v22 }
  0x47   :  { %1548 = vmatprep.mubr.msk.f32.mxu1 %vm110_vm0, %v1950_v25  ;;  %1568 = vmatprep.mubr.msk.f32.mxu0 %vm110_vm0, %v1907_v3 }
  0x4a   :  { %1549 = vmatmul.mubr.msk.f32.gmra.mxu1 %vm110_vm0, %v1946_v23 }
  0x4b   :  { %1551 = vmatprep.mubr.msk.f32.mxu1 %vm110_vm0, %v1957_v29 }
  0x4e   :  { %1552 = vmatmul.mubr.msk.f32.gmra.mxu1 %vm110_vm0, %v1961_v32 }
  0x4f   :  { %1554 = vmatprep.mubr.msk.f32.mxu1 %vm110_vm0, %v1965_v35 }
  0x52   :  { %1555 = vmatmul.mubr.msk.f32.gmra.mxu1 %vm110_vm0, %v1974_v39 }
  0x53   :  { %1557 = vmatprep.mubr.msk.f32.mxu1 %vm110_vm0, %v1978_v40 }
  0x56   :  { %1558 = vmatmul.mubr.msk.f32.gmra.mxu1 %vm110_vm0, %v1987_v46 }
  0xfa   :  { %v1538_v60 = vpop.f32.mrf.mxu1 }
  0xfb   :  { %v369_v14 = vadd.f32 %v1538_v60, %v1358_v6 }
  0xfc   :  { %v363_v61 = vpop.f32.mrf.mxu1 }
  0xfd   :  { %v364_v18 = vadd.f32 %v1358_v6, %v363_v61 }
  0xfe   :  { %v1541_v62 = vpop.f32.mrf.mxu1 }
  0xff   :  { %v379_v27 = vadd.f32 %v1541_v62, %v1358_v6 }
 0x100   :  { %v373_v63 = vpop.f32.mrf.mxu1 }
 0x101   :  { %v374_v20 = vadd.f32 %v1358_v6, %v373_v63 }
 0x102   :  { %v1544_v0 = vpop.f32.mrf.mxu1 }
 0x103   :  { %v389_v36 = vadd.f32 %v1544_v0, %v1358_v6 }
 0x104   :  { %v383_v2 = vpop.f32.mrf.mxu1 }
 0x105   :  { %v384_v31 = vadd.f32 %v1358_v6, %v383_v2 }
 0x106   :  { %v1527_v3 = vpop.f32.mrf.mxu0  ;;  %v1547_v5 = vpop.f32.mrf.mxu1 }
 0x107   :  { %v233_v7 = vadd.f32 %v1527_v3, %v1355_v1  ;;  %v399_v43 = vadd.f32 %v1547_v5, %v1358_v6  ;;  %v445_v3 = vld [vmem:[#allocation7 + $0x18] sm:$0xff]  ;;  %v444_v5 = vld [vmem:[#allocation7 + $0x10] sm:$0xff] }
 0x108   :  { %v227_v9 = vpop.f32.mrf.mxu0  ;;  %v393_v10 = vpop.f32.mrf.mxu1  ;;  %1560 = vmatprep.subr.mxu0 %v445_v3 }
 0x109   :  { %v228_v11 = vadd.f32 %v1355_v1, %v227_v9  ;;  %v237_v15 = vmul.f32 0.35355338, %v233_v7  ;;  %v394_v38 = vadd.f32 %v1358_v6, %v393_v10  ;;  %1561 = vmatpush3.msra.mxu0 %v445_v3  ;;  %v443_v7 = vld [vmem:[#allocation7 + $0x8] sm:$0xff]  ;;  %v442_v9 = vld [vmem:[#allocation7] sm:$0xff] }
 0x10a   :  { %v1550_v16 = vpop.f32.mrf.mxu1  ;;  %1562 = vmatprep.subr.mxu0 %v444_v5 }
 0x10b   :  { %v236_v21 = vmul.f32 0.35355338, %v228_v11  ;;  %v603_v30 = vmul.f32 %v369_v14, %v237_v15  ;;  %v605_v37 = vmul.f32 %v379_v27, %v237_v15  ;;  %v607_v44 = vmul.f32 %v389_v36, %v237_v15  ;;  %1563 = vmatpush3.msra.mxu0 %v444_v5 }
 0x10c   :  { %v403_v24 = vpop.f32.mrf.mxu1  ;;  %v609_v49 = vmul.f32 %v399_v43, %v237_v15  ;;  %v409_v50 = vadd.f32 %v1550_v16, %v1358_v6  ;;  %1564 = vmatprep.subr.mxu0 %v443_v7 }
 0x10d   :  { %v602_v26 = vmul.f32 %v364_v18, %v236_v21  ;;  %v604_v33 = vmul.f32 %v374_v20, %v236_v21  ;;  %v606_v41 = vmul.f32 %v384_v31, %v236_v21  ;;  %v608_v45 = vmul.f32 %v394_v38, %v236_v21  ;;  %1565 = vmatpush3.msra.mxu0 %v443_v7 }
 0x10e   :  { %v1553_v28 = vpop.f32.mrf.mxu1  ;;  %v404_v47 = vadd.f32 %v1358_v6, %v403_v24  ;;  %v611_v54 = vmul.f32 %v409_v50, %v237_v15  ;;  %1566 = vmatprep.subr.mxu0 %v442_v9 }
 0x10f   :  { %1600 = vmatprep.mubr.msk.f32.mxu1 %vm110_vm0, %v602_v26  ;;  %v419_v55 = vadd.f32 %v1553_v28, %v1358_v6  ;;  %1567 = vmatpush3.msra.mxu0 %v442_v9 }
 0x110   :  { %1601 = vmatmul.mubr.msk.f32.vlgmr.msra.gmra.mxu1 %vm110_vm0, %v603_v30  ;;  %v413_v34 = vpop.f32.mrf.mxu1  ;;  %v610_v51 = vmul.f32 %v404_v47, %v236_v21  ;;  %1569 = vmatmul.mubr.msk.f32.vlgmr.msra.gmra.mxu0 %vm110_vm0, %v1909_v4 }
 0x111   :  { %1603 = vmatprep.mubr.msk.f32.mxu1 %vm110_vm0, %v604_v33  ;;  %v414_v52 = vadd.f32 %v1358_v6, %v413_v34  ;;  %v613_v59 = vmul.f32 %v419_v55, %v237_v15  ;;  %1571 = vmatprep.mubr.msk.f32.mxu0 %vm110_vm0, %v1920_v8 }
 0x112   :  { %v1556_v42 = vpop.f32.mrf.mxu1 }
 0x113   :  { %v612_v56 = vmul.f32 %v414_v52, %v236_v21  ;;  %v429_v60 = vadd.f32 %v1556_v42, %v1358_v6 }
 0x114   :  { %1604 = vmatmul.mubr.msk.f32.gmra.mxu1 %vm110_vm0, %v605_v37  ;;  %v423_v48 = vpop.f32.mrf.mxu1  ;;  %1572 = vmatmul.mubr.msk.f32.gmra.mxu0 %vm110_vm0, %v1927_v12 }
 0x115   :  { %1606 = vmatprep.mubr.msk.f32.mxu1 %vm110_vm0, %v606_v41  ;;  %v424_v57 = vadd.f32 %v1358_v6, %v423_v48  ;;  %v615_v63 = vmul.f32 %v429_v60, %v237_v15  ;;  %1574 = vmatprep.mubr.msk.f32.mxu0 %vm110_vm0, %v1929_v13 }
 0x116   :  { %v1559_v53 = vpop.f32.mrf.mxu1 }
 0x117   :  { %v614_v61 = vmul.f32 %v424_v57, %v236_v21  ;;  %v439_v0 = vadd.f32 %v1559_v53, %v1358_v6 }
 0x118   :  { %1607 = vmatmul.mubr.msk.f32.gmra.mxu1 %vm110_vm0, %v607_v44  ;;  %v433_v58 = vpop.f32.mrf.mxu1  ;;  %1575 = vmatmul.mubr.msk.f32.gmra.mxu0 %vm110_vm0, %v1940_v19 }
 0x119   :  { %1609 = vmatprep.mubr.msk.f32.mxu1 %vm110_vm0, %v608_v45  ;;  %v434_v62 = vadd.f32 %v1358_v6, %v433_v58  ;;  %v617_v2 = vmul.f32 %v439_v0, %v237_v15  ;;  %1577 = vmatprep.mubr.msk.f32.mxu0 %vm110_vm0, %v1936_v17  ;;  %v998_v6 = vld [vmem:[%s2303_s10] sm:$0xf] }
 0x11a   :  { %1624 = vmatprep.subr.msk.mxu0 %vm1047_vm1, %v998_v6 }
 0x11b   :  { %v616_v1 = vmul.f32 %v434_v62, %v236_v21  ;;  %1625 = vmatpush3.msk.msra.mxu0 %vm1047_vm1, %v998_v6 }
 0x11c   :  { %1610 = vmatmul.mubr.msk.f32.gmra.mxu1 %vm110_vm0, %v609_v49  ;;  %1578 = vmatmul.mubr.msk.f32.gmra.mxu0 %vm110_vm0, %v1944_v22 }
 0x11d   :  { %1612 = vmatprep.mubr.msk.f32.mxu1 %vm110_vm0, %v610_v51  ;;  %1580 = vmatprep.mubr.msk.f32.mxu0 %vm110_vm0, %v1950_v25 }
 0x120   :  { %1613 = vmatmul.mubr.msk.f32.gmra.mxu1 %vm110_vm0, %v611_v54  ;;  %1581 = vmatmul.mubr.msk.f32.gmra.mxu0 %vm110_vm0, %v1946_v23 }
 0x121   :  { %1615 = vmatprep.mubr.msk.f32.mxu1 %vm110_vm0, %v612_v56  ;;  %1583 = vmatprep.mubr.msk.f32.mxu0 %vm110_vm0, %v1957_v29 }
 0x124   :  { %1616 = vmatmul.mubr.msk.f32.gmra.mxu1 %vm110_vm0, %v613_v59  ;;  %1584 = vmatmul.mubr.msk.f32.gmra.mxu0 %vm110_vm0, %v1961_v32 }
 0x125   :  { %1618 = vmatprep.mubr.msk.f32.mxu1 %vm110_vm0, %v614_v61  ;;  %1586 = vmatprep.mubr.msk.f32.mxu0 %vm110_vm0, %v1965_v35 }
 0x128   :  { %1619 = vmatmul.mubr.msk.f32.gmra.mxu1 %vm110_vm0, %v615_v63  ;;  %1587 = vmatmul.mubr.msk.f32.gmra.mxu0 %vm110_vm0, %v1974_v39 }
 0x129   :  { %1621 = vmatprep.mubr.msk.f32.mxu1 %vm110_vm0, %v616_v1  ;;  %1589 = vmatprep.mubr.msk.f32.mxu0 %vm110_vm0, %v1978_v40 }
 0x12c   :  { %1622 = vmatmul.mubr.msk.f32.gmra.mxu1 %vm110_vm0, %v617_v2  ;;  %1590 = vmatmul.mubr.msk.f32.gmra.mxu0 %vm110_vm0, %v1987_v46 }
 0x1d0   :  { %v2086_v4 = vpop.f32.mrf.mxu1 }
 0x1d1   :  { %v827_v32 = vsel %vm811_vm2, %v2086_v4, 0.0  ;;  %v859_v15 = vsel %vm811_vm2, %v2086_v4, -inf }
 0x1d2   :  { %v2088_v8 = vpop.f32.mrf.mxu1 }
 0x1d3   :  { %v812_v10 = vsel %vm811_vm2, %v2088_v8, 0.0  ;;  %v844_v24 = vsel %vm811_vm2, %v2088_v8, -inf }
 0x1d4   :  { %v2090_v12 = vpop.f32.mrf.mxu1 }
 0x1d5   :  { %v828_v25 = vsel %vm811_vm2, %v2090_v12, 0.0  ;;  %v860_v26 = vsel %vm811_vm2, %v2090_v12, -inf }
 0x1d6   :  { %v2092_v13 = vpop.f32.mrf.mxu1  ;;  %v829_v40 = vadd.f32 %v828_v25, %v827_v32 }
 0x1d7   :  { %v813_v35 = vsel %vm811_vm2, %v2092_v13, 0.0  ;;  %v845_v30 = vsel %vm811_vm2, %v2092_v13, -inf }
 0x1d8   :  { %v2094_v17 = vpop.f32.mrf.mxu1  ;;  %v814_v16 = vadd.f32 %v813_v35, %v812_v10 }
 0x1d9   :  { %v830_v39 = vsel %vm811_vm2, %v2094_v17, 0.0  ;;  %v861_v20 = vsel %vm811_vm2, %v2094_v17, -inf }
 0x1da   :  { %v2096_v19 = vpop.f32.mrf.mxu1  ;;  %v831_v18 = vadd.f32 %v830_v39, %v829_v40  ;;  %v862_v37 = vmax.f32 %v859_v15, %v861_v20 }
 0x1db   :  { %v815_v11 = vsel %vm811_vm2, %v2096_v19, 0.0  ;;  %v846_v38 = vsel %vm811_vm2, %v2096_v19, -inf }
 0x1dc   :  { %v2098_v22 = vpop.f32.mrf.mxu1  ;;  %v816_v31 = vadd.f32 %v815_v11, %v814_v16  ;;  %v847_v58 = vmax.f32 %v844_v24, %v846_v38 }
 0x1dd   :  { %v832_v14 = vsel %vm811_vm2, %v2098_v22, 0.0  ;;  %v863_v34 = vsel %vm811_vm2, %v2098_v22, -inf }
 0x1de   :  { %v2100_v23 = vpop.f32.mrf.mxu1  ;;  %v833_v33 = vadd.f32 %v832_v14, %v831_v18  ;;  %v864_v49 = vmax.f32 %v860_v26, %v863_v34 }
 0x1df   :  { %v817_v27 = vsel %vm811_vm2, %v2100_v23, 0.0  ;;  %v848_v44 = vsel %vm811_vm2, %v2100_v23, -inf }
 0x1e0   :  { %v2104_v29 = vpop.f32.mrf.mxu1  ;;  %v818_v43 = vadd.f32 %v817_v27, %v816_v31  ;;  %v849_v59 = vmax.f32 %v845_v30, %v848_v44 }
 0x1e1   :  { %v834_v28 = vsel %vm811_vm2, %v2104_v29, 0.0  ;;  %v865_v47 = vsel %vm811_vm2, %v2104_v29, -inf }
 0x1e2   :  { %v2112_v46 = vpop.f32.mrf.mxu1  ;;  %v835_v45 = vadd.f32 %v834_v28, %v833_v33  ;;  %v866_v60 = vmax.f32 %v862_v37, %v865_v47 }
 0x1e3   :  { %v819_v41 = vsel %vm811_vm2, %v2112_v46, 0.0  ;;  %v850_v62 = vsel %vm811_vm2, %v2112_v46, -inf }
 0x1e4   :  { %v2124_v21 = vpop.f32.mrf.mxu1  ;;  %v820_v53 = vadd.f32 %v819_v41, %v818_v43  ;;  %v851_v40 = vmax.f32 %v847_v58, %v850_v62 }
 0x1e5   :  { %v836_v42 = vsel %vm811_vm2, %v2124_v21, 0.0  ;;  %v867_v50 = vsel %vm811_vm2, %v2124_v21, -inf }
 0x1e6   :  { %v2138_v36 = vpop.f32.mrf.mxu1  ;;  %v837_v54 = vadd.f32 %v836_v42, %v835_v45  ;;  %v868_v63 = vmax.f32 %v864_v49, %v867_v50 }
 0x1e7   :  { %v821_v51 = vsel %vm811_vm2, %v2138_v36, 0.0  ;;  %v852_v55 = vsel %vm811_vm2, %v2138_v36, -inf }
 0x1e8   :  { %v1620_v48 = vpop.f32.mrf.mxu1  ;;  %v822_v0 = vadd.f32 %v821_v51, %v820_v53  ;;  %v853_v3 = vmax.f32 %v849_v59, %v852_v55 }
 0x1e9   :  { %v838_v52 = vsel %vm811_vm2, %v1620_v48, 0.0  ;;  %v869_v56 = vsel %vm811_vm2, %v1620_v48, -inf }
 0x1ea   :  { %v2158_v57 = vpop.f32.mrf.mxu1  ;;  %v839_v1 = vadd.f32 %v838_v52, %v837_v54  ;;  %v870_v5 = vmax.f32 %v866_v60, %v869_v56 }
 0x1eb   :  { %v823_v61 = vsel %vm811_vm2, %v2158_v57, 0.0  ;;  %v854_v25 = vsel %vm811_vm2, %v2158_v57, -inf }
 0x1ec   :  { %v1623_v2 = vpop.f32.mrf.mxu1  ;;  %v824_v6 = vadd.f32 %v823_v61, %v822_v0  ;;  %v855_v20 = vmax.f32 %v851_v40, %v854_v25 }
 0x1ed   :  { %v840_v7 = vsel %vm811_vm2, %v1623_v2, 0.0  ;;  %v871_v9 = vsel %vm811_vm2, %v1623_v2, -inf }
 0x1ee   :  { %v841_v32 = vadd.f32 %v840_v7, %v839_v1  ;;  %v872_v35 = vmax.f32 %v868_v63, %v871_v9  ;;  %v2168_v39 = vpop.f32.mrf.mxu1 }
 0x1ef   :  { %v825_v10 = vsel %vm811_vm2, %v2168_v39, 0.0  ;;  %v856_v11 = vsel %vm811_vm2, %v2168_v39, -inf }
 0x1f0   :  { %v2174_v14 = vmul.f32 0.125, %v841_v32  ;;  %v873_v15 = vmax.f32 %v870_v5, %v872_v35  ;;  %v826_v16 = vadd.f32 %v825_v10, %v824_v6  ;;  %v857_v18 = vmax.f32 %v853_v3, %v856_v11 }
 0x1f2   :  { %v875_v24 = vmax.f32 %v2174_v14, %v873_v15  ;;  %v2177_v26 = vmul.f32 0.125, %v826_v16  ;;  %v858_v27 = vmax.f32 %v855_v20, %v857_v18 }
 0x1f4   :  { %v883_v28 = vsub.f32 %v2086_v4, %v875_v24  ;;  %v885_v30 = vsub.f32 %v2090_v12, %v875_v24  ;;  %v887_v31 = vsub.f32 %v2094_v17, %v875_v24  ;;  %v889_v33 = vsub.f32 %v2098_v22, %v875_v24 }
 0x1f5   :  { %v891_v34 = vsub.f32 %v2104_v29, %v875_v24  ;;  %v874_v42 = vmax.f32 %v2177_v26, %v858_v27  ;;  %v893_v43 = vsub.f32 %v2124_v21, %v875_v24  ;;  %v895_v45 = vsub.f32 %v1620_v48, %v875_v24 }
 0x1f6   :  { %v900_v37 = vmul.f32 1.442695, %v883_v28  ;;  %v904_v38 = vmul.f32 1.442695, %v885_v30  ;;  %v908_v41 = vmul.f32 1.442695, %v887_v31  ;;  %v897_v51 = vsub.f32 %v1623_v2, %v875_v24 }
 0x1f7   :  { %v912_v44 = vmul.f32 1.442695, %v889_v33  ;;  %v916_v4 = vmul.f32 1.442695, %v891_v34  ;;  %v882_v12 = vsub.f32 %v2088_v8, %v874_v42  ;;  %v884_v17 = vsub.f32 %v2092_v13, %v874_v42 }
 0x1f8   :  { %1668 = vpow2.f32 %v900_v37  ;;  %v920_v22 = vmul.f32 1.442695, %v893_v43  ;;  %v886_v29 = vsub.f32 %v2096_v19, %v874_v42  ;;  %v924_v47 = vmul.f32 1.442695, %v895_v45 }
 0x1f9   :  { %1670 = vpow2.f32 %v904_v38  ;;  %v888_v49 = vsub.f32 %v2100_v23, %v874_v42  ;;  %v898_v50 = vmul.f32 1.442695, %v882_v12  ;;  %v890_v21 = vsub.f32 %v2112_v46, %v874_v42 }
 0x1fa   :  { %1672 = vpow2.f32 %v908_v41  ;;  %v902_v48 = vmul.f32 1.442695, %v884_v17  ;;  %v906_v52 = vmul.f32 1.442695, %v886_v29  ;;  %v892_v8 = vsub.f32 %v2138_v36, %v874_v42 }
 0x1fb   :  { %1674 = vpow2.f32 %v912_v44  ;;  %v910_v53 = vmul.f32 1.442695, %v888_v49  ;;  %v894_v13 = vsub.f32 %v2158_v57, %v874_v42  ;;  %v914_v19 = vmul.f32 1.442695, %v890_v21 }
 0x1fc   :  { %1676 = vpow2.f32 %v916_v4  ;;  %v928_v54 = vmul.f32 1.442695, %v897_v51  ;;  %v896_v23 = vsub.f32 %v2168_v39, %v874_v42  ;;  %v918_v55 = vmul.f32 1.442695, %v892_v8 }
 0x1fd   :  { %1678 = vpow2.f32 %v920_v22  ;;  %v877_v58 = vsub.f32 %v2174_v14, %v875_v24  ;;  %v922_v59 = vmul.f32 1.442695, %v894_v13  ;;  %v876_v1 = vsub.f32 %v2177_v26, %v874_v42 }
 0x1fe   :  { %1680 = vpow2.f32 %v924_v47  ;;  %v926_v63 = vmul.f32 1.442695, %v896_v23 }
 0x1ff   :  { %1682 = vpow2.f32 %v898_v50  ;;  %v880_v3 = vmul.f32 1.442695, %v877_v58  ;;  %v878_v35 = vmul.f32 1.442695, %v876_v1 }
 0x200   :  { %1684 = vpow2.f32 %v902_v48 }
 0x201   :  { %1686 = vpow2.f32 %v906_v52 }
 0x202   :  { %1688 = vpow2.f32 %v910_v53 }
 0x203   :  { %1690 = vpow2.f32 %v914_v19 }
 0x204   :  { %1692 = vpow2.f32 %v928_v54 }
 0x205   :  { %v2194_v46 = vpop.eup %1668  ;;  %1694 = vpow2.f32 %v918_v55 }
 0x206   :  { %v2196_v56 = vpop.eup %1670  ;;  %v945_v36 = vsel %vm811_vm2, %v2194_v46, 0.0  ;;  %1696 = vpow2.f32 %v922_v59 }
 0x207   :  { %v2201_v57 = vpop.eup %1672  ;;  %v946_v60 = vsel %vm811_vm2, %v2196_v56, 0.0  ;;  %1698 = vpow2.f32 %v926_v63 }
 0x208   :  { %v2205_v61 = vpop.eup %1674  ;;  %v947_v62 = vadd.f32 %v946_v60, %v945_v36  ;;  %v948_v0 = vsel %vm811_vm2, %v2201_v57, 0.0  ;;  %1700 = vpow2.f32 %v880_v3 }
 0x209   :  { %v2210_v2 = vpop.eup %1676  ;;  %v950_v7 = vsel %vm811_vm2, %v2205_v61, 0.0  ;;  %1702 = vpow2.f32 %v878_v35 }
 0x20a   :  { %v949_v5 = vadd.f32 %v948_v0, %v947_v62  ;;  %v2214_v9 = vpop.eup %1678  ;;  %v952_v32 = vsel %vm811_vm2, %v2210_v2, 0.0 }
 0x20b   :  { %v2216_v25 = vpop.eup %1680  ;;  %v954_v11 = vsel %vm811_vm2, %v2214_v9, 0.0 }
 0x20c   :  { %v951_v6 = vadd.f32 %v950_v7, %v949_v5  ;;  %v1683_v39 = vpop.eup %1682  ;;  %v956_v28 = vsel %vm811_vm2, %v2216_v25, 0.0 }
 0x20d   :  { %v1685_v10 = vpop.eup %1684  ;;  %v930_v14 = vsel %vm811_vm2, %v1683_v39, 0.0 }
 0x20e   :  { %v953_v40 = vadd.f32 %v952_v32, %v951_v6  ;;  %v1687_v15 = vpop.eup %1686  ;;  %v931_v18 = vsel %vm811_vm2, %v1685_v10, 0.0 }
 0x20f   :  { %v1689_v20 = vpop.eup %1688  ;;  %v932_v24 = vadd.f32 %v931_v18, %v930_v14  ;;  %v933_v26 = vsel %vm811_vm2, %v1687_v15, 0.0 }
 0x210   :  { %v955_v16 = vadd.f32 %v954_v11, %v953_v40  ;;  %v1691_v27 = vpop.eup %1690  ;;  %v935_v34 = vsel %vm811_vm2, %v1689_v20, 0.0 }
 0x211   :  { %v934_v30 = vadd.f32 %v933_v26, %v932_v24  ;;  %v2227_v31 = vpop.eup %1692  ;;  %v937_v41 = vsel %vm811_vm2, %v1691_v27, 0.0  ;;  %v1244_v24 = vld [vmem:[#allocation8 + $0x10] sm:$0xff]  ;;  %v1242_v26 = vld [vmem:[#allocation8] sm:$0xff] }
 0x212   :  { %v957_v33 = vadd.f32 %v956_v28, %v955_v16  ;;  %v1695_v37 = vpop.eup %1694  ;;  %v958_v43 = vsel %vm811_vm2, %v2227_v31, 0.0 }
 0x213   :  { %v936_v38 = vadd.f32 %v935_v34, %v934_v30  ;;  %v1697_v42 = vpop.eup %1696  ;;  %v939_v4 = vsel %vm811_vm2, %v1695_v37, 0.0 }
 0x214   :  { %v959_v45 = vadd.f32 %v958_v43, %v957_v33  ;;  %v1699_v12 = vpop.eup %1698  ;;  %v941_v22 = vsel %vm811_vm2, %v1697_v42, 0.0 }
 0x215   :  { %v938_v44 = vadd.f32 %v937_v41, %v936_v38  ;;  %v1701_v29 = vpop.eup %1700  ;;  %v943_v50 = vsel %vm811_vm2, %v1699_v12, 0.0 }
 0x216   :  { %v961_v49 = vadd.f32 %v1701_v29, %v959_v45  ;;  %v1703_v48 = vpop.eup %1702  ;;  %v965_v8 = vmul.f32 0.125, %v1701_v29 }
 0x217   :  { %v940_v17 = vadd.f32 %v939_v4, %v938_v44  ;;  %v964_v52 = vmul.f32 0.125, %v1703_v48 }
 0x218   :  { %1704 = vrcp.f32 %v961_v49  ;;  %v967_v54 = vadd.f32 %v2194_v46, %v965_v8  ;;  %v969_v59 = vadd.f32 %v2196_v56, %v965_v8  ;;  %v971_v0 = vadd.f32 %v2201_v57, %v965_v8 }
 0x219   :  { %v942_v47 = vadd.f32 %v941_v22, %v940_v17  ;;  %v966_v13 = vadd.f32 %v1683_v39, %v964_v52  ;;  %v968_v55 = vadd.f32 %v1685_v10, %v964_v52  ;;  %v970_v60 = vadd.f32 %v1687_v15, %v964_v52 }
 0x21a   :  { %v972_v46 = vadd.f32 %v1689_v20, %v964_v52  ;;  %v973_v5 = vadd.f32 %v2205_v61, %v965_v8  ;;  %v974_v56 = vadd.f32 %v1691_v27, %v964_v52  ;;  %v975_v32 = vadd.f32 %v2210_v2, %v965_v8  ;;  %v1245_v20 = vld [vmem:[#allocation8 + $0x18] sm:$0xff]  ;;  %v1570_v27 = vpop.f32.mrf.mxu0 }
 0x21b   :  { %v944_v21 = vadd.f32 %v943_v50, %v942_v47  ;;  %v976_v57 = vadd.f32 %v1695_v37, %v964_v52  ;;  %v977_v40 = vadd.f32 %v2214_v9, %v965_v8  ;;  %v978_v61 = vadd.f32 %v1697_v42, %v964_v52  ;;  %1650 = vmatprep.subr.mxu1 %v1245_v20 }
 0x21c   :  { %v979_v14 = vadd.f32 %v2216_v25, %v965_v8  ;;  %v980_v2 = vadd.f32 %v1699_v12, %v964_v52  ;;  %v981_v18 = vadd.f32 %v2227_v31, %v965_v8  ;;  %1651 = vmatpush3.msra.mxu1 %v1245_v20  ;;  %v1243_v25 = vld [vmem:[#allocation8 + $0x8] sm:$0xff]  ;;  %v519_v28 = vpop.f32.mrf.mxu0 }
 0x21d   :  { %v960_v51 = vadd.f32 %v1703_v48, %v944_v21  ;;  %1652 = vmatprep.subr.mxu1 %v1244_v24  ;;  %v1375_v48 = vld [vmem:[%s2299_s6] ss:$0 sm:$0xff] }
 0x21e   :  { %1653 = vmatpush3.msra.mxu1 %v1244_v24  ;;  %v1573_v30 = vpop.f32.mrf.mxu0 }
 0x21f   :  { %1706 = vrcp.f32 %v960_v51  ;;  %1654 = vmatprep.subr.mxu1 %v1243_v25  ;;  %v535_v8 = vadd.f32 %v1573_v30, %v1375_v48 }
 0x220   :  { %1655 = vmatpush3.msra.mxu1 %v1243_v25  ;;  %v529_v31 = vpop.f32.mrf.mxu0 }
 0x221   :  { %1656 = vmatprep.subr.mxu1 %v1242_v26  ;;  %v530_v52 = vadd.f32 %v1375_v48, %v529_v31 }
 0x222   :  { %1657 = vmatpush3.msra.mxu1 %v1242_v26  ;;  %v1576_v33 = vpop.f32.mrf.mxu0 }
 0x224   :  { %v539_v34 = vpop.f32.mrf.mxu0 }
 0x225   :  { %v1705_v53 = vpop.eup %1704 }
 0x226   :  { %v983_v58 = vmul.f32 %v1705_v53, %v967_v54  ;;  %v985_v62 = vmul.f32 %v1705_v53, %v969_v59  ;;  %v987_v1 = vmul.f32 %v1705_v53, %v971_v0  ;;  %v989_v7 = vmul.f32 %v1705_v53, %v973_v5  ;;  %v1579_v37 = vpop.f32.mrf.mxu0 }
 0x227   :  { %v991_v35 = vmul.f32 %v1705_v53, %v975_v32  ;;  %v993_v10 = vmul.f32 %v1705_v53, %v977_v40  ;;  %v995_v15 = vmul.f32 %v1705_v53, %v979_v14  ;;  %v997_v9 = vmul.f32 %v1705_v53, %v981_v18 }
 0x228   :  { %v549_v38 = vpop.f32.mrf.mxu0 }
 0x229   :  { %v550_v59 = vadd.f32 %v1375_v48, %v549_v38 }
 0x22a   :  { %v1582_v41 = vpop.f32.mrf.mxu0 }
 0x22c   :  { %v1707_v19 = vpop.eup %1706  ;;  %v559_v42 = vpop.f32.mrf.mxu0 }
 0x22d   :  { %v982_v23 = vmul.f32 %v1707_v19, %v966_v13  ;;  %v984_v36 = vmul.f32 %v1707_v19, %v968_v55  ;;  %v986_v63 = vmul.f32 %v1707_v19, %v970_v60  ;;  %v988_v3 = vmul.f32 %v1707_v19, %v972_v46 }
 0x22e   :  { %v990_v6 = vmul.f32 %v1707_v19, %v974_v56  ;;  %v992_v39 = vmul.f32 %v1707_v19, %v976_v57  ;;  %v994_v11 = vmul.f32 %v1707_v19, %v978_v61  ;;  %v996_v16 = vmul.f32 %v1707_v19, %v980_v2  ;;  %v1585_v43 = vpop.f32.mrf.mxu0 }
 0x22f   :  { %1626 = vmatprep.mubr.msk.f32.mxu0 %vm811_vm2, %v982_v23  ;;  %v520_v13 = vadd.f32 %v1375_v48, %v519_v28  ;;  %v540_v19 = vadd.f32 %v1375_v48, %v539_v34  ;;  %v525_v23 = vadd.f32 %v1570_v27, %v1375_v48  ;;  %v545_v55 = vadd.f32 %v1576_v33, %v1375_v48 }
 0x230   :  { %1627 = vmatmul.mubr.msk.f32.vlgmr.msra.gmra.mxu0 %vm811_vm2, %v983_v58  ;;  %v569_v44 = vpop.f32.mrf.mxu0 }
 0x231   :  { %1629 = vmatprep.mubr.msk.f32.mxu0 %vm811_vm2, %v984_v36 }
 0x232   :  { %v1588_v45 = vpop.f32.mrf.mxu0 }
 0x233   :  { %v585_v24 = vadd.f32 %v1588_v45, %v1375_v48 }
 0x234   :  { %1630 = vmatmul.mubr.msk.f32.gmra.mxu0 %vm811_vm2, %v985_v62  ;;  %v579_v4 = vpop.f32.mrf.mxu0 }
 0x235   :  { %1632 = vmatprep.mubr.msk.f32.mxu0 %vm811_vm2, %v986_v63  ;;  %v555_v63 = vadd.f32 %v1579_v37, %v1375_v48  ;;  %v580_v30 = vadd.f32 %v1375_v48, %v579_v4 }
 0x236   :  { %v1591_v12 = vpop.f32.mrf.mxu0 }
 0x238   :  { %1633 = vmatmul.mubr.msk.f32.gmra.mxu0 %vm811_vm2, %v987_v1  ;;  %v2260_v17 = vpop.f32.mrf.mxu0 }
 0x239   :  { %1635 = vmatprep.mubr.msk.f32.mxu0 %vm811_vm2, %v988_v3  ;;  %v560_v3 = vadd.f32 %v1375_v48, %v559_v42  ;;  %v595_v42 = vadd.f32 %v1591_v12, %v1375_v48 }
 0x23c   :  { %1636 = vmatmul.mubr.msk.f32.gmra.mxu0 %vm811_vm2, %v989_v7  ;;  %v565_v7 = vadd.f32 %v1582_v41, %v1375_v48 }
 0x23d   :  { %1638 = vmatprep.mubr.msk.f32.mxu0 %vm811_vm2, %v990_v6  ;;  %v575_v6 = vadd.f32 %v1585_v43, %v1375_v48 }
 0x240   :  { %1639 = vmatmul.mubr.msk.f32.gmra.mxu0 %vm811_vm2, %v991_v35 }
 0x241   :  { %1641 = vmatprep.mubr.msk.f32.mxu0 %vm811_vm2, %v992_v39  ;;  %v570_v39 = vadd.f32 %v1375_v48, %v569_v44 }
 0x244   :  { %1642 = vmatmul.mubr.msk.f32.gmra.mxu0 %vm811_vm2, %v993_v10 }
 0x245   :  { %1644 = vmatprep.mubr.msk.f32.mxu0 %vm811_vm2, %v994_v11 }
 0x248   :  { %1645 = vmatmul.mubr.msk.f32.gmra.mxu0 %vm811_vm2, %v995_v15 }
 0x249   :  { %1647 = vmatprep.mubr.msk.f32.mxu0 %vm811_vm2, %v996_v16 }
 0x24c   :  { %1648 = vmatmul.mubr.msk.f32.gmra.mxu0 %vm811_vm2, %v997_v9 }
 0x2f0   :  { %v1628_v22 = vpop.f32.mrf.mxu0 }
 0x2f1   :  { %v1197_v0 = vmul.f32 %v1628_v22, %v525_v23 }
 0x2f2   :  { %v1117_v29 = vpop.f32.mrf.mxu0 }
 0x2f3   :  { %v1196_v60 = vmul.f32 %v1117_v29, %v520_v13  ;;  %v1227_v11 = vsel %vm110_vm0, %v1197_v0, 0.0 }
 0x2f4   :  { %v1631_v47 = vpop.f32.mrf.mxu0 }
 0x2f5   :  { %v1199_v58 = vmul.f32 %v1631_v47, %v535_v8  ;;  %v1212_v40 = vsel %vm110_vm0, %v1196_v60, 0.0 }
 0x2f6   :  { %v1127_v49 = vpop.f32.mrf.mxu0 }
 0x2f7   :  { %v1198_v54 = vmul.f32 %v1127_v49, %v530_v52  ;;  %v1228_v32 = vsel %vm110_vm0, %v1199_v58, 0.0  ;;  %v590_v49 = vadd.f32 %v1375_v48, %v2260_v17  ;;  %v1425_v17 = vld [vmem:[%s2301_s8] ss:$0 sm:$0xff] }
 0x2f8   :  { %v1634_v50 = vpop.f32.mrf.mxu0  ;;  %v1229_v18 = vadd.f32 %v1228_v32, %v1227_v11 }
 0x2f9   :  { %v1201_v46 = vmul.f32 %v1634_v50, %v545_v55  ;;  %v1213_v5 = vsel %vm110_vm0, %v1198_v54, 0.0 }
 0x2fa   :  { %v1137_v21 = vpop.f32.mrf.mxu0  ;;  %v1214_v14 = vadd.f32 %v1213_v5, %v1212_v40 }
 0x2fb   :  { %v1200_v62 = vmul.f32 %v1137_v21, %v540_v19  ;;  %v1230_v2 = vsel %vm110_vm0, %v1201_v46, 0.0 }
 0x2fc   :  { %v1637_v51 = vpop.f32.mrf.mxu0  ;;  %v1231_v31 = vadd.f32 %v1230_v2, %v1229_v18 }
 0x2fd   :  { %v1203_v57 = vmul.f32 %v1637_v51, %v555_v63  ;;  %v1215_v61 = vsel %vm110_vm0, %v1200_v62, 0.0 }
 0x2fe   :  { %v1147_v53 = vpop.f32.mrf.mxu0  ;;  %v1216_v25 = vadd.f32 %v1215_v61, %v1214_v14 }
 0x2ff   :  { %v1202_v56 = vmul.f32 %v1147_v53, %v550_v59  ;;  %v1232_v26 = vsel %vm110_vm0, %v1203_v57, 0.0 }
 0x300   :  { %v1640_v36 = vpop.f32.mrf.mxu0  ;;  %v1233_v43 = vadd.f32 %v1232_v26, %v1231_v31 }
 0x301   :  { %v1205_v15 = vmul.f32 %v1640_v36, %v565_v7  ;;  %v1217_v9 = vsel %vm110_vm0, %v1202_v56, 0.0 }
 0x302   :  { %v1157_v1 = vpop.f32.mrf.mxu0  ;;  %v1218_v34 = vadd.f32 %v1217_v9, %v1216_v25 }
 0x303   :  { %v1204_v10 = vmul.f32 %v1157_v1, %v560_v3  ;;  %v1234_v37 = vsel %vm110_vm0, %v1205_v15, 0.0 }
 0x304   :  { %v1643_v35 = vpop.f32.mrf.mxu0  ;;  %v1235_v4 = vadd.f32 %v1234_v37, %v1233_v43 }
 0x305   :  { %v1207_v27 = vmul.f32 %v1643_v35, %v575_v6  ;;  %v1219_v33 = vsel %vm110_vm0, %v1204_v10, 0.0 }
 0x306   :  { %v1167_v16 = vpop.f32.mrf.mxu0  ;;  %v1220_v45 = vadd.f32 %v1219_v33, %v1218_v34 }
 0x307   :  { %v1206_v20 = vmul.f32 %v1167_v16, %v570_v39  ;;  %v1236_v29 = vsel %vm110_vm0, %v1207_v27, 0.0 }
 0x308   :  { %v1646_v28 = vpop.f32.mrf.mxu0  ;;  %v1237_v53 = vadd.f32 %v1236_v29, %v1235_v4 }
 0x309   :  { %v1209_v38 = vmul.f32 %v1646_v28, %v585_v24  ;;  %v1221_v44 = vsel %vm110_vm0, %v1206_v20, 0.0 }
 0x30a   :  { %v1177_v41 = vpop.f32.mrf.mxu0  ;;  %v1222_v51 = vadd.f32 %v1221_v44, %v1220_v45 }
 0x30b   :  { %v1208_v22 = vmul.f32 %v1177_v41, %v580_v30  ;;  %v1238_v52 = vsel %vm110_vm0, %v1209_v38, 0.0 }
 0x30c   :  { %v1649_v47 = vpop.f32.mrf.mxu0  ;;  %v1239_v54 = vadd.f32 %v1238_v52, %v1237_v53 }
 0x30d   :  { %v1223_v50 = vsel %vm110_vm0, %v1208_v22, 0.0  ;;  %v1211_v21 = vmul.f32 %v1649_v47, %v595_v42 }
 0x30e   :  { %v1187_v8 = vpop.f32.mrf.mxu0  ;;  %v1224_v13 = vadd.f32 %v1223_v50, %v1222_v51 }
 0x30f   :  { %v1210_v12 = vmul.f32 %v1187_v8, %v590_v49  ;;  %v1240_v19 = vsel %vm110_vm0, %v1211_v21, 0.0 }
 0x310   :  { %v1241_v58 = vadd.f32 %v1240_v19, %v1239_v54 }
 0x311   :  { %v1225_v23 = vsel %vm110_vm0, %v1210_v12, 0.0 }
 0x312   :  { %v1226_v55 = vadd.f32 %v1225_v23, %v1224_v13 }
 0x314   :  { %1658 = vmatprep.mubr.msk.f32.mxu1 %vm110_vm0, %v1226_v55 }
 0x315   :  { %1659 = vmatmul.mubr.msk.f32.vlgmr.msra.gmra.mxu1 %vm110_vm0, %v1241_v58 }
 0x3d5   :  { %v1660_v48 = vpop.f32.mrf.mxu1 }
 0x3d6   :  { %v1331_v36 = vadd.f32 %v1660_v48, %v1425_v17 }
 0x3d7   :  { %v1325_v59 = vpop.f32.mrf.mxu1 }
 0x3d8   :  { %1335 = vst [vmem:[#allocation10 + $0x8] sm:$0xff] %v1331_v36  ;;  %v1326_v60 = vadd.f32 %v1425_v17, %v1325_v59 }
 0x3da   :  { %1334 = vst [vmem:[#allocation10] sm:$0xff] %v1326_v60 }
 0x3db   :  { %1799 = shalt.err (!%p1796_p10)
}
 0x3dc   :  { %1347 = dma.vmem_to_hbm [thread:$0]  %s1342_s5, 256, %s2304_s11, [#allocation4], %s1818_s22, %s1818_s22, %s1819_s23  }
 0x3dd   :  { %1814 = dma.done.wait [#allocation4], 256  }
 0x3de   :  { %1815 = vsyncadd [#allocation4], 4294967040 }
 0x3df   :  { %1351 = vsyncpa [#allocation3], 1 }
 0x3e0   :  { %1352 = vsyncpa [#allocation6], 1 }
 0x3e1   :  { %1353 = vsyncpa [#allocation9], 1 }
 0x3e2   :  { %1354 = vsyncpa [#allocation4], 1 }

// kernel: tpu_custom_call.1
= control target key start
LH: loop header
LB: loop body
LE: loop exit
PB: predicated region body
PF: predicated region fallthrough
CT: control target
= control target key end

     0   :  { %16 = vsyncpa [#allocation3], 0  ;;  %s2293_s0 = inlined_call_operand.hbm [shape: f32[8,16,32], index: 0, kind: input, shape index: {}]   ;;  %s2294_s1 = inlined_call_operand.vmem [shape: f32[32,32], index: 1, kind: input, shape index: {}]   ;;  %s2295_s2 = inlined_call_operand.vmem [shape: f32[1,32], index: 2, kind: input, shape index: {}]   ;;  %s2296_s3 = inlined_call_operand.hbm [shape: f32[32,32], index: 3, kind: input, shape index: {}]   ;;  %s2297_s4 = inlined_call_operand.vmem [shape: f32[1,32], index: 4, kind: input, shape index: {}]   ;;  %s2298_s5 = inlined_call_operand.hbm [shape: f32[32,32], index: 5, kind: input, shape index: {}]   ;;  %s2299_s6 = inlined_call_operand.vmem [shape: f32[1,32], index: 6, kind: input, shape index: {}]   ;;  %s2300_s7 = inlined_call_operand.hbm [shape: f32[32,128], index: 7, kind: input, shape index: {}]   ;;  %s2301_s8 = inlined_call_operand.vmem [shape: f32[1,128], index: 8, kind: input, shape index: {}]   ;;  %s2302_s9 = inlined_call_operand.vmem [shape: f32[32,4], index: 9, kind: input, shape index: {}]   ;;  %s2303_s10 = inlined_call_operand.vmem [shape: f32[4,32], index: 10, kind: input, shape index: {}]   ;;  %s2304_s11 = inlined_call_operand.hbm [shape: f32[16,128], index: 11, kind: output, shape index: {}]  }
   0x1   :  { %17 = vsyncpa [#allocation6], 0 }
   0x2   :  { %18 = vsyncpa [#allocation9], 0 }
   0x3   :  { %19 = vsyncpa [#allocation4], 0  ;;  %s1816_s17 = smov [#allocation5]   ;;  %s1817_s19 = smov [#allocation2]  }
   0x4   :  { %s41_s18 = sshll.u32 %s1816_s17, 4  ;;  %s25_s20 = sshll.u32 %s1817_s19, 4  ;;  %s42_s18 = int_to_ptr.vmem [resolvable:$true] %s41_s18  ;;  %s26_s20 = int_to_ptr.vmem [resolvable:$true] %s25_s20 }
   0x5   :  { %s1716_s21 = scalar_lea.vmem %s42_s18, 512  ;;  %p1721_p1 = scmp.lt.s32.totalorder %s42_s18, %s42_s18 }
   0x6   :  { %p1717_p0 = scmp.ne.s32.totalorder %s42_s18, %s1716_s21  ;;  %p1722_p2 = scmp.lt.s32.totalorder %s1716_s21, %s1716_s21 }
   0x8   :  { %p1723_p3 = por %p1722_p2, %p1721_p1 }
   0xa   :  { %p1724_p4 = pnand %p1723_p3, %p1717_p0 }
   0xc   :  { %1727 = shalt.err (!%p1724_p4)
}
   0xd   :  { %s1818_s22 = smov 128   ;;  %s1819_s23 = smov 8  }
   0xe   :  { %47 = dma.hbm_to_vmem [thread:$0]  %s2296_s3, 512, %s42_s18, [#allocation6], %s1818_s22, %s1818_s22, %s1819_s23  }
   0xf   :  { %s1736_s26 = scalar_lea.vmem %s26_s20, 2048  ;;  %p1741_p6 = scmp.lt.s32.totalorder %s26_s20, %s26_s20 }
  0x10   :  { %p1737_p5 = scmp.ne.s32.totalorder %s26_s20, %s1736_s26  ;;  %p1742_p7 = scmp.lt.s32.totalorder %s1736_s26, %s1736_s26 }
  0x12   :  { %p1743_p8 = por %p1742_p7, %p1741_p6 }
  0x14   :  { %p1744_p9 = pnand %p1743_p8, %p1737_p5 }
  0x16   :  { %1747 = shalt.err (!%p1744_p9)
}
  0x17   :  { %31 = dma.hbm_to_vmem [thread:$0]  %s2293_s0, 2048, %s26_s20, [#allocation3], %s1818_s22, %s1818_s22, %s1819_s23  }
  0x18   :  { %s1820_s29 = smov [#allocation7]   ;;  %s1821_s12 = smov [#allocation8]  }
  0x19   :  { %s55_s30 = sshll.u32 %s1820_s29, 4  ;;  %s69_s13 = sshll.u32 %s1821_s12, 4  ;;  %s56_s30 = int_to_ptr.vmem [resolvable:$true] %s55_s30  ;;  %s70_s13 = int_to_ptr.vmem [resolvable:$true] %s69_s13 }
  0x1a   :  { %s1756_s3 = scalar_lea.vmem %s56_s30, 512  ;;  %p1761_p11 = scmp.lt.s32.totalorder %s56_s30, %s56_s30 }
  0x1b   :  { %p1757_p10 = scmp.ne.s32.totalorder %s56_s30, %s1756_s3  ;;  %p1762_p12 = scmp.lt.s32.totalorder %s1756_s3, %s1756_s3 }
  0x1d   :  { %p1763_p13 = por %p1762_p12, %p1761_p11 }
  0x1f   :  { %p1764_p0 = pnand %p1763_p13, %p1757_p10 }
  0x21   :  { %1767 = shalt.err (!%p1764_p0)
}
  0x22   :  { %61 = dma.hbm_to_vmem [thread:$0]  %s2298_s5, 512, %s56_s30, [#allocation6], %s1818_s22, %s1818_s22, %s1819_s23  }
  0x23   :  { %s1776_s0 = scalar_lea.vmem %s70_s13, 512  ;;  %p1781_p2 = scmp.lt.s32.totalorder %s70_s13, %s70_s13 }
  0x24   :  { %p1777_p1 = scmp.ne.s32.totalorder %s70_s13, %s1776_s0  ;;  %p1782_p3 = scmp.lt.s32.totalorder %s1776_s0, %s1776_s0 }
  0x26   :  { %p1783_p4 = por %p1782_p3, %p1781_p2 }
  0x28   :  { %p1784_p5 = pnand %p1783_p4, %p1777_p1 }
  0x2a   :  { %1787 = shalt.err (!%p1784_p5)
}
  0x2b   :  { %75 = dma.hbm_to_vmem [thread:$0]  %s2300_s7, 512, %s70_s13, [#allocation9], %s1818_s22, %s1818_s22, %s1819_s23  }
  0x2c   :  { %1808 = dma.done.wait [#allocation3], 2048  }
  0x2d   :  { %1809 = vsyncadd [#allocation3], 4294965248 }
  0x2e   :  { %1810 = dma.done.wait [#allocation6], 1024  }
  0x2f   :  { %1811 = vsyncadd [#allocation6], 4294966272 }
  0x30   :  { %1812 = dma.done.wait [#allocation9], 512  }
  0x31   :  { %1813 = vsyncadd [#allocation9], 4294966784  ;;  %vm110_vm0 = vcmask 261120   ;;  %v241_v0 = vld [vmem:[#allocation5 + $0x18] sm:$0xff]  ;;  %v240_v1 = vld [vmem:[#allocation5 + $0x10] sm:$0xff]  ;;  %vm1047_vm1 = vcmask 1043456  }
  0x32   :  { %1528 = vmatprep.subr.mxu1 %v241_v0  ;;  %v239_v2 = vld [vmem:[#allocation5 + $0x8] sm:$0xff]  ;;  %v1907_v3 = vld [vmem:[#allocation2] sm:$0xff]  ;;  %v147_v7 = vld [vmem:[%s2294_s1 + $0x18] sm:$0xff]  ;;  %vm811_vm2 = vcmask 31744   ;;  %s1822_s17 = smov [#allocation10]  }
  0x33   :  { %v1909_v4 = vld [vmem:[#allocation2 + $0x8] sm:$0xff]  ;;  %1529 = vmatpush3.msra.mxu1 %v241_v0  ;;  %v111_v5 = vsel %vm110_vm0, %v1907_v3, 0.0  ;;  %1536 = vmatprep.mubr.msk.f32.mxu1 %vm110_vm0, %v1907_v3  ;;  %v1920_v8 = vld [vmem:[#allocation2 + $0x10] sm:$0xff]  ;;  %v238_v10 = vld [vmem:[#allocation5] sm:$0xff]  ;;  %s1341_s5 = sshll.u32 %s1822_s17, 4  ;;  %s1342_s5 = int_to_ptr.vmem [resolvable:$true] %s1341_s5 }
  0x34   :  { %v126_v6 = vsel %vm110_vm0, %v1909_v4, 0.0  ;;  %v146_v9 = vld [vmem:[%s2294_s1 + $0x10] sm:$0xff]  ;;  %1530 = vmatprep.subr.mxu1 %v240_v1  ;;  %1517 = vmatprep.subr.mxu0 %v147_v7  ;;  %v112_v11 = vsel %vm110_vm0, %v1920_v8, 0.0  ;;  %v1927_v12 = vld [vmem:[#allocation2 + $0x18] sm:$0xff]  ;;  %v1929_v13 = vld [vmem:[#allocation2 + $0x20] sm:$0xff]  ;;  %s1788_s7 = scalar_lea.vmem %s1342_s5, 256  ;;  %p1793_p7 = scmp.lt.s32.totalorder %s1342_s5, %s1342_s5 }
  0x35   :  { %1531 = vmatpush3.msra.mxu1 %v240_v1  ;;  %1518 = vmatpush3.msra.mxu0 %v147_v7  ;;  %v113_v14 = vadd.f32 %v112_v11, %v111_v5  ;;  %v127_v15 = vsel %vm110_vm0, %v1927_v12, 0.0  ;;  %v145_v16 = vld [vmem:[%s2294_s1 + $0x8] sm:$0xff]  ;;  %v1936_v17 = vld [vmem:[#allocation2 + $0x30] sm:$0xff]  ;;  %v114_v18 = vsel %vm110_vm0, %v1929_v13, 0.0  ;;  %v1944_v22 = vld [vmem:[#allocation2 + $0x38] sm:$0xff]  ;;  %p1789_p6 = scmp.ne.s32.totalorder %s1342_s5, %s1788_s7  ;;  %p1794_p8 = scmp.lt.s32.totalorder %s1788_s7, %s1788_s7 }
  0x36   :  { %v1940_v19 = vld [vmem:[#allocation2 + $0x28] sm:$0xff]  ;;  %1532 = vmatprep.subr.mxu1 %v239_v2  ;;  %1519 = vmatprep.subr.mxu0 %v146_v9  ;;  %v128_v20 = vadd.f32 %v127_v15, %v126_v6  ;;  %v116_v21 = vsel %vm110_vm0, %v1936_v17, 0.0  ;;  %v1950_v25 = vld [vmem:[#allocation2 + $0x40] sm:$0xff]  ;;  %v131_v28 = vsel %vm110_vm0, %v1944_v22, 0.0  ;;  %v1957_v29 = vld [vmem:[#allocation2 + $0x50] sm:$0xff] }
  0x37   :  { %v1946_v23 = vld [vmem:[#allocation2 + $0x48] sm:$0xff]  ;;  %v129_v24 = vsel %vm110_vm0, %v1940_v19, 0.0  ;;  %1533 = vmatpush3.msra.mxu1 %v239_v2  ;;  %1520 = vmatpush3.msra.mxu0 %v146_v9  ;;  %v115_v26 = vadd.f32 %v114_v18, %v113_v14  ;;  %v144_v27 = vld [vmem:[%s2294_s1] sm:$0xff]  ;;  %v118_v31 = vsel %vm110_vm0, %v1950_v25, 0.0  ;;  %v1961_v32 = vld [vmem:[#allocation2 + $0x58] sm:$0xff]  ;;  %v120_v38 = vsel %vm110_vm0, %v1957_v29, 0.0  ;;  %p1795_p9 = por %p1794_p8, %p1793_p7 }
  0x38   :  { %1534 = vmatprep.subr.mxu1 %v238_v10  ;;  %1521 = vmatprep.subr.mxu0 %v145_v16  ;;  %v130_v30 = vadd.f32 %v129_v24, %v128_v20  ;;  %v133_v34 = vsel %vm110_vm0, %v1946_v23, 0.0  ;;  %v1965_v35 = vld [vmem:[#allocation2 + $0x60] sm:$0xff]  ;;  %v601_v36 = vld [vmem:[%s2302_s9 + $0x18] sm:$0xff]  ;;  %v1974_v39 = vld [vmem:[#allocation2 + $0x68] sm:$0xff]  ;;  %v135_v42 = vsel %vm110_vm0, %v1961_v32, 0.0 }
  0x39   :  { %1535 = vmatpush3.msra.mxu1 %v238_v10  ;;  %1522 = vmatpush3.msra.mxu0 %v145_v16  ;;  %v117_v33 = vadd.f32 %v116_v21, %v115_v26  ;;  %v1978_v40 = vld [vmem:[#allocation2 + $0x70] sm:$0xff]  ;;  %v122_v45 = vsel %vm110_vm0, %v1965_v35, 0.0  ;;  %v1987_v46 = vld [vmem:[#allocation2 + $0x78] sm:$0xff]  ;;  %v137_v48 = vsel %vm110_vm0, %v1974_v39, 0.0  ;;  %v599_v58 = vld [vmem:[%s2302_s9 + $0x8] sm:$0xff]  ;;  %p1796_p10 = pnand %p1795_p9, %p1789_p6 }
  0x3a   :  { %1537 = vmatmul.mubr.msk.f32.vlgmr.msra.gmra.mxu1 %vm110_vm0, %v1909_v4  ;;  %1523 = vmatprep.subr.mxu0 %v144_v27  ;;  %v132_v37 = vadd.f32 %v131_v28, %v130_v30  ;;  %v600_v43 = vld [vmem:[%s2302_s9 + $0x10] sm:$0xff]  ;;  %v124_v49 = vsel %vm110_vm0, %v1978_v40, 0.0  ;;  %v139_v52 = vsel %vm110_vm0, %v1987_v46, 0.0  ;;  %v598_v59 = vld [vmem:[%s2302_s9] sm:$0xff] }
  0x3b   :  { %1539 = vmatprep.mubr.msk.f32.mxu1 %vm110_vm0, %v1920_v8  ;;  %1524 = vmatpush3.msra.mxu0 %v144_v27  ;;  %v119_v41 = vadd.f32 %v118_v31, %v117_v33  ;;  %v1355_v1 = vld [vmem:[%s2295_s2] ss:$0 sm:$0xff] }
  0x3c   :  { %v134_v44 = vadd.f32 %v133_v34, %v132_v37  ;;  %1592 = vmatprep.subr.mxu1 %v601_v36  ;;  %v1358_v6 = vld [vmem:[%s2297_s4] ss:$0 sm:$0xff] }
  0x3d   :  { %v121_v47 = vadd.f32 %v120_v38, %v119_v41  ;;  %1593 = vmatpush3.msra.mxu1 %v601_v36 }
  0x3e   :  { %1540 = vmatmul.mubr.msk.f32.gmra.mxu1 %vm110_vm0, %v1927_v12  ;;  %v136_v50 = vadd.f32 %v135_v42, %v134_v44  ;;  %1594 = vmatprep.subr.mxu1 %v600_v43 }
  0x3f   :  { %1542 = vmatprep.mubr.msk.f32.mxu1 %vm110_vm0, %v1929_v13  ;;  %v123_v51 = vadd.f32 %v122_v45, %v121_v47  ;;  %1595 = vmatpush3.msra.mxu1 %v600_v43 }
  0x40   :  { %v138_v53 = vadd.f32 %v137_v48, %v136_v50  ;;  %1596 = vmatprep.subr.mxu1 %v599_v58 }
  0x41   :  { %v125_v54 = vadd.f32 %v124_v49, %v123_v51  ;;  %1597 = vmatpush3.msra.mxu1 %v599_v58 }
  0x42   :  { %1543 = vmatmul.mubr.msk.f32.gmra.mxu1 %vm110_vm0, %v1940_v19  ;;  %v140_v55 = vadd.f32 %v139_v52, %v138_v53  ;;  %1598 = vmatprep.subr.mxu1 %v598_v59 }
  0x43   :  { %v142_v56 = vmul.f32 0.125, %v125_v54  ;;  %1545 = vmatprep.mubr.msk.f32.mxu1 %vm110_vm0, %v1936_v17  ;;  %1599 = vmatpush3.msra.mxu1 %v598_v59 }
  0x44   :  { %v143_v57 = vmul.f32 0.125, %v140_v55 }
  0x45   :  { %1525 = vmatprep.mubr.msk.f32.mxu0 %vm110_vm0, %v142_v56 }
  0x46   :  { %1526 = vmatmul.mubr.msk.f32.vlgmr.msra.gmra.mxu0 %vm110_vm0, %v143_v57  ;;  %1546 = vmatmul.mubr.msk.f32.gmra.mxu1 %vm110_vm0, %v1944_v22 }
  0x47   :  { %1548 = vmatprep.mubr.msk.f32.mxu1 %vm110_vm0, %v1950_v25  ;;  %1568 = vmatprep.mubr.msk.f32.mxu0 %vm110_vm0, %v1907_v3 }
  0x4a   :  { %1549 = vmatmul.mubr.msk.f32.gmra.mxu1 %vm110_vm0, %v1946_v23 }
  0x4b   :  { %1551 = vmatprep.mubr.msk.f32.mxu1 %vm110_vm0, %v1957_v29 }
  0x4e   :  { %1552 = vmatmul.mubr.msk.f32.gmra.mxu1 %vm110_vm0, %v1961_v32 }
  0x4f   :  { %1554 = vmatprep.mubr.msk.f32.mxu1 %vm110_vm0, %v1965_v35 }
  0x52   :  { %1555 = vmatmul.mubr.msk.f32.gmra.mxu1 %vm110_vm0, %v1974_v39 }
  0x53   :  { %1557 = vmatprep.mubr.msk.f32.mxu1 %vm110_vm0, %v1978_v40 }
  0x56   :  { %1558 = vmatmul.mubr.msk.f32.gmra.mxu1 %vm110_vm0, %v1987_v46 }
  0xfa   :  { %v1538_v60 = vpop.f32.mrf.mxu1 }
  0xfb   :  { %v369_v14 = vadd.f32 %v1538_v60, %v1358_v6 }
  0xfc   :  { %v363_v61 = vpop.f32.mrf.mxu1 }
  0xfd   :  { %v364_v18 = vadd.f32 %v1358_v6, %v363_v61 }
  0xfe   :  { %v1541_v62 = vpop.f32.mrf.mxu1 }
  0xff   :  { %v379_v27 = vadd.f32 %v1541_v62, %v1358_v6 }
 0x100   :  { %v373_v63 = vpop.f32.mrf.mxu1 }
 0x101   :  { %v374_v20 = vadd.f32 %v1358_v6, %v373_v63 }
 0x102   :  { %v1544_v0 = vpop.f32.mrf.mxu1 }
 0x103   :  { %v389_v36 = vadd.f32 %v1544_v0, %v1358_v6 }
 0x104   :  { %v383_v2 = vpop.f32.mrf.mxu1 }
 0x105   :  { %v384_v31 = vadd.f32 %v1358_v6, %v383_v2 }
 0x106   :  { %v1527_v3 = vpop.f32.mrf.mxu0  ;;  %v1547_v5 = vpop.f32.mrf.mxu1 }
 0x107   :  { %v233_v7 = vadd.f32 %v1527_v3, %v1355_v1  ;;  %v399_v43 = vadd.f32 %v1547_v5, %v1358_v6  ;;  %v445_v3 = vld [vmem:[#allocation7 + $0x18] sm:$0xff]  ;;  %v444_v5 = vld [vmem:[#allocation7 + $0x10] sm:$0xff] }
 0x108   :  { %v227_v9 = vpop.f32.mrf.mxu0  ;;  %v393_v10 = vpop.f32.mrf.mxu1  ;;  %1560 = vmatprep.subr.mxu0 %v445_v3 }
 0x109   :  { %v228_v11 = vadd.f32 %v1355_v1, %v227_v9  ;;  %v237_v15 = vmul.f32 0.35355338, %v233_v7  ;;  %v394_v38 = vadd.f32 %v1358_v6, %v393_v10  ;;  %1561 = vmatpush3.msra.mxu0 %v445_v3  ;;  %v443_v7 = vld [vmem:[#allocation7 + $0x8] sm:$0xff]  ;;  %v442_v9 = vld [vmem:[#allocation7] sm:$0xff] }
 0x10a   :  { %v1550_v16 = vpop.f32.mrf.mxu1  ;;  %1562 = vmatprep.subr.mxu0 %v444_v5 }
 0x10b   :  { %v236_v21 = vmul.f32 0.35355338, %v228_v11  ;;  %v603_v30 = vmul.f32 %v369_v14, %v237_v15  ;;  %v605_v37 = vmul.f32 %v379_v27, %v237_v15  ;;  %v607_v44 = vmul.f32 %v389_v36, %v237_v15  ;;  %1563 = vmatpush3.msra.mxu0 %v444_v5 }
 0x10c   :  { %v403_v24 = vpop.f32.mrf.mxu1  ;;  %v609_v49 = vmul.f32 %v399_v43, %v237_v15  ;;  %v409_v50 = vadd.f32 %v1550_v16, %v1358_v6  ;;  %1564 = vmatprep.subr.mxu0 %v443_v7 }
 0x10d   :  { %v602_v26 = vmul.f32 %v364_v18, %v236_v21  ;;  %v604_v33 = vmul.f32 %v374_v20, %v236_v21  ;;  %v606_v41 = vmul.f32 %v384_v31, %v236_v21  ;;  %v608_v45 = vmul.f32 %v394_v38, %v236_v21  ;;  %1565 = vmatpush3.msra.mxu0 %v443_v7 }
 0x10e   :  { %v1553_v28 = vpop.f32.mrf.mxu1  ;;  %v404_v47 = vadd.f32 %v1358_v6, %v403_v24  ;;  %v611_v54 = vmul.f32 %v409_v50, %v237_v15  ;;  %1566 = vmatprep.subr.mxu0 %v442_v9 }
 0x10f   :  { %1600 = vmatprep.mubr.msk.f32.mxu1 %vm110_vm0, %v602_v26  ;;  %v419_v55 = vadd.f32 %v1553_v28, %v1358_v6  ;;  %1567 = vmatpush3.msra.mxu0 %v442_v9 }
 0x110   :  { %1601 = vmatmul.mubr.msk.f32.vlgmr.msra.gmra.mxu1 %vm110_vm0, %v603_v30  ;;  %v413_v34 = vpop.f32.mrf.mxu1  ;;  %v610_v51 = vmul.f32 %v404_v47, %v236_v21  ;;  %1569 = vmatmul.mubr.msk.f32.vlgmr.msra.gmra.mxu0 %vm110_vm0, %v1909_v4 }
 0x111   :  { %1603 = vmatprep.mubr.msk.f32.mxu1 %vm110_vm0, %v604_v33  ;;  %v414_v52 = vadd.f32 %v1358_v6, %v413_v34  ;;  %v613_v59 = vmul.f32 %v419_v55, %v237_v15  ;;  %1571 = vmatprep.mubr.msk.f32.mxu0 %vm110_vm0, %v1920_v8 }
 0x112   :  { %v1556_v42 = vpop.f32.mrf.mxu1 }
 0x113   :  { %v612_v56 = vmul.f32 %v414_v52, %v236_v21  ;;  %v429_v60 = vadd.f32 %v1556_v42, %v1358_v6 }
 0x114   :  { %1604 = vmatmul.mubr.msk.f32.gmra.mxu1 %vm110_vm0, %v605_v37  ;;  %v423_v48 = vpop.f32.mrf.mxu1  ;;  %1572 = vmatmul.mubr.msk.f32.gmra.mxu0 %vm110_vm0, %v1927_v12 }
 0x115   :  { %1606 = vmatprep.mubr.msk.f32.mxu1 %vm110_vm0, %v606_v41  ;;  %v424_v57 = vadd.f32 %v1358_v6, %v423_v48  ;;  %v615_v63 = vmul.f32 %v429_v60, %v237_v15  ;;  %1574 = vmatprep.mubr.msk.f32.mxu0 %vm110_vm0, %v1929_v13 }
 0x116   :  { %v1559_v53 = vpop.f32.mrf.mxu1 }
 0x117   :  { %v614_v61 = vmul.f32 %v424_v57, %v236_v21  ;;  %v439_v0 = vadd.f32 %v1559_v53, %v1358_v6 }
 0x118   :  { %1607 = vmatmul.mubr.msk.f32.gmra.mxu1 %vm110_vm0, %v607_v44  ;;  %v433_v58 = vpop.f32.mrf.mxu1  ;;  %1575 = vmatmul.mubr.msk.f32.gmra.mxu0 %vm110_vm0, %v1940_v19 }
 0x119   :  { %1609 = vmatprep.mubr.msk.f32.mxu1 %vm110_vm0, %v608_v45  ;;  %v434_v62 = vadd.f32 %v1358_v6, %v433_v58  ;;  %v617_v2 = vmul.f32 %v439_v0, %v237_v15  ;;  %1577 = vmatprep.mubr.msk.f32.mxu0 %vm110_vm0, %v1936_v17  ;;  %v998_v6 = vld [vmem:[%s2303_s10] sm:$0xf] }
 0x11a   :  { %1624 = vmatprep.subr.msk.mxu0 %vm1047_vm1, %v998_v6 }
 0x11b   :  { %v616_v1 = vmul.f32 %v434_v62, %v236_v21  ;;  %1625 = vmatpush3.msk.msra.mxu0 %vm1047_vm1, %v998_v6 }
 0x11c   :  { %1610 = vmatmul.mubr.msk.f32.gmra.mxu1 %vm110_vm0, %v609_v49  ;;  %1578 = vmatmul.mubr.msk.f32.gmra.mxu0 %vm110_vm0, %v1944_v22 }
 0x11d   :  { %1612 = vmatprep.mubr.msk.f32.mxu1 %vm110_vm0, %v610_v51  ;;  %1580 = vmatprep.mubr.msk.f32.mxu0 %vm110_vm0, %v1950_v25 }
 0x120   :  { %1613 = vmatmul.mubr.msk.f32.gmra.mxu1 %vm110_vm0, %v611_v54  ;;  %1581 = vmatmul.mubr.msk.f32.gmra.mxu0 %vm110_vm0, %v1946_v23 }
 0x121   :  { %1615 = vmatprep.mubr.msk.f32.mxu1 %vm110_vm0, %v612_v56  ;;  %1583 = vmatprep.mubr.msk.f32.mxu0 %vm110_vm0, %v1957_v29 }
 0x124   :  { %1616 = vmatmul.mubr.msk.f32.gmra.mxu1 %vm110_vm0, %v613_v59  ;;  %1584 = vmatmul.mubr.msk.f32.gmra.mxu0 %vm110_vm0, %v1961_v32 }
 0x125   :  { %1618 = vmatprep.mubr.msk.f32.mxu1 %vm110_vm0, %v614_v61  ;;  %1586 = vmatprep.mubr.msk.f32.mxu0 %vm110_vm0, %v1965_v35 }
 0x128   :  { %1619 = vmatmul.mubr.msk.f32.gmra.mxu1 %vm110_vm0, %v615_v63  ;;  %1587 = vmatmul.mubr.msk.f32.gmra.mxu0 %vm110_vm0, %v1974_v39 }
 0x129   :  { %1621 = vmatprep.mubr.msk.f32.mxu1 %vm110_vm0, %v616_v1  ;;  %1589 = vmatprep.mubr.msk.f32.mxu0 %vm110_vm0, %v1978_v40 }
 0x12c   :  { %1622 = vmatmul.mubr.msk.f32.gmra.mxu1 %vm110_vm0, %v617_v2  ;;  %1590 = vmatmul.mubr.msk.f32.gmra.mxu0 %vm110_vm0, %v1987_v46 }
 0x1d0   :  { %v2086_v4 = vpop.f32.mrf.mxu1 }
 0x1d1   :  { %v827_v32 = vsel %vm811_vm2, %v2086_v4, 0.0  ;;  %v859_v15 = vsel %vm811_vm2, %v2086_v4, -inf }
 0x1d2   :  { %v2088_v8 = vpop.f32.mrf.mxu1 }
 0x1d3   :  { %v812_v10 = vsel %vm811_vm2, %v2088_v8, 0.0  ;;  %v844_v24 = vsel %vm811_vm2, %v2088_v8, -inf }
 0x1d4   :  { %v2090_v12 = vpop.f32.mrf.mxu1 }
 0x1d5   :  { %v828_v25 = vsel %vm811_vm2, %v2090_v12, 0.0  ;;  %v860_v26 = vsel %vm811_vm2, %v2090_v12, -inf }
 0x1d6   :  { %v2092_v13 = vpop.f32.mrf.mxu1  ;;  %v829_v40 = vadd.f32 %v828_v25, %v827_v32 }
 0x1d7   :  { %v813_v35 = vsel %vm811_vm2, %v2092_v13, 0.0  ;;  %v845_v30 = vsel %vm811_vm2, %v2092_v13, -inf }
 0x1d8   :  { %v2094_v17 = vpop.f32.mrf.mxu1  ;;  %v814_v16 = vadd.f32 %v813_v35, %v812_v10 }
 0x1d9   :  { %v830_v39 = vsel %vm811_vm2, %v2094_v17, 0.0  ;;  %v861_v20 = vsel %vm811_vm2, %v2094_v17, -inf }
 0x1da   :  { %v2096_v19 = vpop.f32.mrf.mxu1  ;;  %v831_v18 = vadd.f32 %v830_v39, %v829_v40  ;;  %v862_v37 = vmax.f32 %v859_v15, %v861_v20 }
 0x1db   :  { %v815_v11 = vsel %vm811_vm2, %v2096_v19, 0.0  ;;  %v846_v38 = vsel %vm811_vm2, %v2096_v19, -inf }
 0x1dc   :  { %v2098_v22 = vpop.f32.mrf.mxu1  ;;  %v816_v31 = vadd.f32 %v815_v11, %v814_v16  ;;  %v847_v58 = vmax.f32 %v844_v24, %v846_v38 }
 0x1dd   :  { %v832_v14 = vsel %vm811_vm2, %v2098_v22, 0.0  ;;  %v863_v34 = vsel %vm811_vm2, %v2098_v22, -inf }
 0x1de   :  { %v2100_v23 = vpop.f32.mrf.mxu1  ;;  %v833_v33 = vadd.f32 %v832_v14, %v831_v18  ;;  %v864_v49 = vmax.f32 %v860_v26, %v863_v34 }
 0x1df   :  { %v817_v27 = vsel %vm811_vm2, %v2100_v23, 0.0  ;;  %v848_v44 = vsel %vm811_vm2, %v2100_v23, -inf }
 0x1e0   :  { %v2104_v29 = vpop.f32.mrf.mxu1  ;;  %v818_v43 = vadd.f32 %v817_v27, %v816_v31  ;;  %v849_v59 = vmax.f32 %v845_v30, %v848_v44 }
 0x1e1   :  { %v834_v28 = vsel %vm811_vm2, %v2104_v29, 0.0  ;;  %v865_v47 = vsel %vm811_vm2, %v2104_v29, -inf }
 0x1e2   :  { %v2112_v46 = vpop.f32.mrf.mxu1  ;;  %v835_v45 = vadd.f32 %v834_v28, %v833_v33  ;;  %v866_v60 = vmax.f32 %v862_v37, %v865_v47 }
 0x1e3   :  { %v819_v41 = vsel %vm811_vm2, %v2112_v46, 0.0  ;;  %v850_v62 = vsel %vm811_vm2, %v2112_v46, -inf }
 0x1e4   :  { %v2124_v21 = vpop.f32.mrf.mxu1  ;;  %v820_v53 = vadd.f32 %v819_v41, %v818_v43  ;;  %v851_v40 = vmax.f32 %v847_v58, %v850_v62 }
 0x1e5   :  { %v836_v42 = vsel %vm811_vm2, %v2124_v21, 0.0  ;;  %v867_v50 = vsel %vm811_vm2, %v2124_v21, -inf }
 0x1e6   :  { %v2138_v36 = vpop.f32.mrf.mxu1  ;;  %v837_v54 = vadd.f32 %v836_v42, %v835_v45  ;;  %v868_v63 = vmax.f32 %v864_v49, %v867_v50 }
 0x1e7   :  { %v821_v51 = vsel %vm811_vm2, %v2138_v36, 0.0  ;;  %v852_v55 = vsel %vm811_vm2, %v2138_v36, -inf }
 0x1e8   :  { %v1620_v48 = vpop.f32.mrf.mxu1  ;;  %v822_v0 = vadd.f32 %v821_v51, %v820_v53  ;;  %v853_v3 = vmax.f32 %v849_v59, %v852_v55 }
 0x1e9   :  { %v838_v52 = vsel %vm811_vm2, %v1620_v48, 0.0  ;;  %v869_v56 = vsel %vm811_vm2, %v1620_v48, -inf }
 0x1ea   :  { %v2158_v57 = vpop.f32.mrf.mxu1  ;;  %v839_v1 = vadd.f32 %v838_v52, %v837_v54  ;;  %v870_v5 = vmax.f32 %v866_v60, %v869_v56 }
 0x1eb   :  { %v823_v61 = vsel %vm811_vm2, %v2158_v57, 0.0  ;;  %v854_v25 = vsel %vm811_vm2, %v2158_v57, -inf }
 0x1ec   :  { %v1623_v2 = vpop.f32.mrf.mxu1  ;;  %v824_v6 = vadd.f32 %v823_v61, %v822_v0  ;;  %v855_v20 = vmax.f32 %v851_v40, %v854_v25 }
 0x1ed   :  { %v840_v7 = vsel %vm811_vm2, %v1623_v2, 0.0  ;;  %v871_v9 = vsel %vm811_vm2, %v1623_v2, -inf }
 0x1ee   :  { %v841_v32 = vadd.f32 %v840_v7, %v839_v1  ;;  %v872_v35 = vmax.f32 %v868_v63, %v871_v9  ;;  %v2168_v39 = vpop.f32.mrf.mxu1 }
 0x1ef   :  { %v825_v10 = vsel %vm811_vm2, %v2168_v39, 0.0  ;;  %v856_v11 = vsel %vm811_vm2, %v2168_v39, -inf }
 0x1f0   :  { %v2174_v14 = vmul.f32 0.125, %v841_v32  ;;  %v873_v15 = vmax.f32 %v870_v5, %v872_v35  ;;  %v826_v16 = vadd.f32 %v825_v10, %v824_v6  ;;  %v857_v18 = vmax.f32 %v853_v3, %v856_v11 }
 0x1f2   :  { %v875_v24 = vmax.f32 %v2174_v14, %v873_v15  ;;  %v2177_v26 = vmul.f32 0.125, %v826_v16  ;;  %v858_v27 = vmax.f32 %v855_v20, %v857_v18 }
 0x1f4   :  { %v883_v28 = vsub.f32 %v2086_v4, %v875_v24  ;;  %v885_v30 = vsub.f32 %v2090_v12, %v875_v24  ;;  %v887_v31 = vsub.f32 %v2094_v17, %v875_v24  ;;  %v889_v33 = vsub.f32 %v2098_v22, %v875_v24 }
 0x1f5   :  { %v891_v34 = vsub.f32 %v2104_v29, %v875_v24  ;;  %v874_v42 = vmax.f32 %v2177_v26, %v858_v27  ;;  %v893_v43 = vsub.f32 %v2124_v21, %v875_v24  ;;  %v895_v45 = vsub.f32 %v1620_v48, %v875_v24 }
 0x1f6   :  { %v900_v37 = vmul.f32 1.442695, %v883_v28  ;;  %v904_v38 = vmul.f32 1.442695, %v885_v30  ;;  %v908_v41 = vmul.f32 1.442695, %v887_v31  ;;  %v897_v51 = vsub.f32 %v1623_v2, %v875_v24 }
 0x1f7   :  { %v912_v44 = vmul.f32 1.442695, %v889_v33  ;;  %v916_v4 = vmul.f32 1.442695, %v891_v34  ;;  %v882_v12 = vsub.f32 %v2088_v8, %v874_v42  ;;  %v884_v17 = vsub.f32 %v2092_v13, %v874_v42 }
 0x1f8   :  { %1668 = vpow2.f32 %v900_v37  ;;  %v920_v22 = vmul.f32 1.442695, %v893_v43  ;;  %v886_v29 = vsub.f32 %v2096_v19, %v874_v42  ;;  %v924_v47 = vmul.f32 1.442695, %v895_v45 }
 0x1f9   :  { %1670 = vpow2.f32 %v904_v38  ;;  %v888_v49 = vsub.f32 %v2100_v23, %v874_v42  ;;  %v898_v50 = vmul.f32 1.442695, %v882_v12  ;;  %v890_v21 = vsub.f32 %v2112_v46, %v874_v42 }
 0x1fa   :  { %1672 = vpow2.f32 %v908_v41  ;;  %v902_v48 = vmul.f32 1.442695, %v884_v17  ;;  %v906_v52 = vmul.f32 1.442695, %v886_v29  ;;  %v892_v8 = vsub.f32 %v2138_v36, %v874_v42 }
 0x1fb   :  { %1674 = vpow2.f32 %v912_v44  ;;  %v910_v53 = vmul.f32 1.442695, %v888_v49  ;;  %v894_v13 = vsub.f32 %v2158_v57, %v874_v42  ;;  %v914_v19 = vmul.f32 1.442695, %v890_v21 }
 0x1fc   :  { %1676 = vpow2.f32 %v916_v4  ;;  %v928_v54 = vmul.f32 1.442695, %v897_v51  ;;  %v896_v23 = vsub.f32 %v2168_v39, %v874_v42  ;;  %v918_v55 = vmul.f32 1.442695, %v892_v8 }
 0x1fd   :  { %1678 = vpow2.f32 %v920_v22  ;;  %v877_v58 = vsub.f32 %v2174_v14, %v875_v24  ;;  %v922_v59 = vmul.f32 1.442695, %v894_v13  ;;  %v876_v1 = vsub.f32 %v2177_v26, %v874_v42 }
 0x1fe   :  { %1680 = vpow2.f32 %v924_v47  ;;  %v926_v63 = vmul.f32 1.442695, %v896_v23 }
 0x1ff   :  { %1682 = vpow2.f32 %v898_v50  ;;  %v880_v3 = vmul.f32 1.442695, %v877_v58  ;;  %v878_v35 = vmul.f32 1.442695, %v876_v1 }
 0x200   :  { %1684 = vpow2.f32 %v902_v48 }
 0x201   :  { %1686 = vpow2.f32 %v906_v52 }
 0x202   :  { %1688 = vpow2.f32 %v910_v53 }
 0x203   :  { %1690 = vpow2.f32 %v914_v19 }
 0x204   :  { %1692 = vpow2.f32 %v928_v54 }
 0x205   :  { %v2194_v46 = vpop.eup %1668  ;;  %1694 = vpow2.f32 %v918_v55 }
 0x206   :  { %v2196_v56 = vpop.eup %1670  ;;  %v945_v36 = vsel %vm811_vm2, %v2194_v46, 0.0  ;;  %1696 = vpow2.f32 %v922_v59 }
 0x207   :  { %v2201_v57 = vpop.eup %1672  ;;  %v946_v60 = vsel %vm811_vm2, %v2196_v56, 0.0  ;;  %1698 = vpow2.f32 %v926_v63 }
 0x208   :  { %v2205_v61 = vpop.eup %1674  ;;  %v947_v62 = vadd.f32 %v946_v60, %v945_v36  ;;  %v948_v0 = vsel %vm811_vm2, %v2201_v57, 0.0  ;;  %1700 = vpow2.f32 %v880_v3 }
 0x209   :  { %v2210_v2 = vpop.eup %1676  ;;  %v950_v7 = vsel %vm811_vm2, %v2205_v61, 0.0  ;;  %1702 = vpow2.f32 %v878_v35 }
 0x20a   :  { %v949_v5 = vadd.f32 %v948_v0, %v947_v62  ;;  %v2214_v9 = vpop.eup %1678  ;;  %v952_v32 = vsel %vm811_vm2, %v2210_v2, 0.0 }
 0x20b   :  { %v2216_v25 = vpop.eup %1680  ;;  %v954_v11 = vsel %vm811_vm2, %v2214_v9, 0.0 }
 0x20c   :  { %v951_v6 = vadd.f32 %v950_v7, %v949_v5  ;;  %v1683_v39 = vpop.eup %1682  ;;  %v956_v28 = vsel %vm811_vm2, %v2216_v25, 0.0 }
 0x20d   :  { %v1685_v10 = vpop.eup %1684  ;;  %v930_v14 = vsel %vm811_vm2, %v1683_v39, 0.0 }
 0x20e   :  { %v953_v40 = vadd.f32 %v952_v32, %v951_v6  ;;  %v1687_v15 = vpop.eup %1686  ;;  %v931_v18 = vsel %vm811_vm2, %v1685_v10, 0.0 }
 0x20f   :  { %v1689_v20 = vpop.eup %1688  ;;  %v932_v24 = vadd.f32 %v931_v18, %v930_v14  ;;  %v933_v26 = vsel %vm811_vm2, %v1687_v15, 0.0 }
 0x210   :  { %v955_v16 = vadd.f32 %v954_v11, %v953_v40  ;;  %v1691_v27 = vpop.eup %1690  ;;  %v935_v34 = vsel %vm811_vm2, %v1689_v20, 0.0 }
 0x211   :  { %v934_v30 = vadd.f32 %v933_v26, %v932_v24  ;;  %v2227_v31 = vpop.eup %1692  ;;  %v937_v41 = vsel %vm811_vm2, %v1691_v27, 0.0  ;;  %v1244_v24 = vld [vmem:[#allocation8 + $0x10] sm:$0xff]  ;;  %v1242_v26 = vld [vmem:[#allocation8] sm:$0xff] }
 0x212   :  { %v957_v33 = vadd.f32 %v956_v28, %v955_v16  ;;  %v1695_v37 = vpop.eup %1694  ;;  %v958_v43 = vsel %vm811_vm2, %v2227_v31, 0.0 }
 0x213   :  { %v936_v38 = vadd.f32 %v935_v34, %v934_v30  ;;  %v1697_v42 = vpop.eup %1696  ;;  %v939_v4 = vsel %vm811_vm2, %v1695_v37, 0.0 }
 0x214   :  { %v959_v45 = vadd.f32 %v958_v43, %v957_v33  ;;  %v1699_v12 = vpop.eup %1698  ;;  %v941_v22 = vsel %vm811_vm2, %v1697_v42, 0.0 }
 0x215   :  { %v938_v44 = vadd.f32 %v937_v41, %v936_v38  ;;  %v1701_v29 = vpop.eup %1700  ;;  %v943_v50 = vsel %vm811_vm2, %v1699_v12, 0.0 }
 0x216   :  { %v961_v49 = vadd.f32 %v1701_v29, %v959_v45  ;;  %v1703_v48 = vpop.eup %1702  ;;  %v965_v8 = vmul.f32 0.125, %v1701_v29 }
 0x217   :  { %v940_v17 = vadd.f32 %v939_v4, %v938_v44  ;;  %v964_v52 = vmul.f32 0.125, %v1703_v48 }
 0x218   :  { %1704 = vrcp.f32 %v961_v49  ;;  %v967_v54 = vadd.f32 %v2194_v46, %v965_v8  ;;  %v969_v59 = vadd.f32 %v2196_v56, %v965_v8  ;;  %v971_v0 = vadd.f32 %v2201_v57, %v965_v8 }
 0x219   :  { %v942_v47 = vadd.f32 %v941_v22, %v940_v17  ;;  %v966_v13 = vadd.f32 %v1683_v39, %v964_v52  ;;  %v968_v55 = vadd.f32 %v1685_v10, %v964_v52  ;;  %v970_v60 = vadd.f32 %v1687_v15, %v964_v52 }
 0x21a   :  { %v972_v46 = vadd.f32 %v1689_v20, %v964_v52  ;;  %v973_v5 = vadd.f32 %v2205_v61, %v965_v8  ;;  %v974_v56 = vadd.f32 %v1691_v27, %v964_v52  ;;  %v975_v32 = vadd.f32 %v2210_v2, %v965_v8  ;;  %v1245_v20 = vld [vmem:[#allocation8 + $0x18] sm:$0xff]  ;;  %v1570_v27 = vpop.f32.mrf.mxu0 }
 0x21b   :  { %v944_v21 = vadd.f32 %v943_v50, %v942_v47  ;;  %v976_v57 = vadd.f32 %v1695_v37, %v964_v52  ;;  %v977_v40 = vadd.f32 %v2214_v9, %v965_v8  ;;  %v978_v61 = vadd.f32 %v1697_v42, %v964_v52  ;;  %1650 = vmatprep.subr.mxu1 %v1245_v20 }
 0x21c   :  { %v979_v14 = vadd.f32 %v2216_v25, %v965_v8  ;;  %v980_v2 = vadd.f32 %v1699_v12, %v964_v52  ;;  %v981_v18 = vadd.f32 %v2227_v31, %v965_v8  ;;  %1651 = vmatpush3.msra.mxu1 %v1245_v20  ;;  %v1243_v25 = vld [vmem:[#allocation8 + $0x8] sm:$0xff]  ;;  %v519_v28 = vpop.f32.mrf.mxu0 }
 0x21d   :  { %v960_v51 = vadd.f32 %v1703_v48, %v944_v21  ;;  %1652 = vmatprep.subr.mxu1 %v1244_v24  ;;  %v1375_v48 = vld [vmem:[%s2299_s6] ss:$0 sm:$0xff] }
 0x21e   :  { %1653 = vmatpush3.msra.mxu1 %v1244_v24  ;;  %v1573_v30 = vpop.f32.mrf.mxu0 }
 0x21f   :  { %1706 = vrcp.f32 %v960_v51  ;;  %1654 = vmatprep.subr.mxu1 %v1243_v25  ;;  %v535_v8 = vadd.f32 %v1573_v30, %v1375_v48 }
 0x220   :  { %1655 = vmatpush3.msra.mxu1 %v1243_v25  ;;  %v529_v31 = vpop.f32.mrf.mxu0 }
 0x221   :  { %1656 = vmatprep.subr.mxu1 %v1242_v26  ;;  %v530_v52 = vadd.f32 %v1375_v48, %v529_v31 }
 0x222   :  { %1657 = vmatpush3.msra.mxu1 %v1242_v26  ;;  %v1576_v33 = vpop.f32.mrf.mxu0 }
 0x224   :  { %v539_v34 = vpop.f32.mrf.mxu0 }
 0x225   :  { %v1705_v53 = vpop.eup %1704 }
 0x226   :  { %v983_v58 = vmul.f32 %v1705_v53, %v967_v54  ;;  %v985_v62 = vmul.f32 %v1705_v53, %v969_v59  ;;  %v987_v1 = vmul.f32 %v1705_v53, %v971_v0  ;;  %v989_v7 = vmul.f32 %v1705_v53, %v973_v5  ;;  %v1579_v37 = vpop.f32.mrf.mxu0 }
 0x227   :  { %v991_v35 = vmul.f32 %v1705_v53, %v975_v32  ;;  %v993_v10 = vmul.f32 %v1705_v53, %v977_v40  ;;  %v995_v15 = vmul.f32 %v1705_v53, %v979_v14  ;;  %v997_v9 = vmul.f32 %v1705_v53, %v981_v18 }
 0x228   :  { %v549_v38 = vpop.f32.mrf.mxu0 }
 0x229   :  { %v550_v59 = vadd.f32 %v1375_v48, %v549_v38 }
 0x22a   :  { %v1582_v41 = vpop.f32.mrf.mxu0 }
 0x22c   :  { %v1707_v19 = vpop.eup %1706  ;;  %v559_v42 = vpop.f32.mrf.mxu0 }
 0x22d   :  { %v982_v23 = vmul.f32 %v1707_v19, %v966_v13  ;;  %v984_v36 = vmul.f32 %v1707_v19, %v968_v55  ;;  %v986_v63 = vmul.f32 %v1707_v19, %v970_v60  ;;  %v988_v3 = vmul.f32 %v1707_v19, %v972_v46 }
 0x22e   :  { %v990_v6 = vmul.f32 %v1707_v19, %v974_v56  ;;  %v992_v39 = vmul.f32 %v1707_v19, %v976_v57  ;;  %v994_v11 = vmul.f32 %v1707_v19, %v978_v61  ;;  %v996_v16 = vmul.f32 %v1707_v19, %v980_v2  ;;  %v1585_v43 = vpop.f32.mrf.mxu0 }
 0x22f   :  { %1626 = vmatprep.mubr.msk.f32.mxu0 %vm811_vm2, %v982_v23  ;;  %v520_v13 = vadd.f32 %v1375_v48, %v519_v28  ;;  %v540_v19 = vadd.f32 %v1375_v48, %v539_v34  ;;  %v525_v23 = vadd.f32 %v1570_v27, %v1375_v48  ;;  %v545_v55 = vadd.f32 %v1576_v33, %v1375_v48 }
 0x230   :  { %1627 = vmatmul.mubr.msk.f32.vlgmr.msra.gmra.mxu0 %vm811_vm2, %v983_v58  ;;  %v569_v44 = vpop.f32.mrf.mxu0 }
 0x231   :  { %1629 = vmatprep.mubr.msk.f32.mxu0 %vm811_vm2, %v984_v36 }
 0x232   :  { %v1588_v45 = vpop.f32.mrf.mxu0 }
 0x233   :  { %v585_v24 = vadd.f32 %v1588_v45, %v1375_v48 }
 0x234   :  { %1630 = vmatmul.mubr.msk.f32.gmra.mxu0 %vm811_vm2, %v985_v62  ;;  %v579_v4 = vpop.f32.mrf.mxu0 }
 0x235   :  { %1632 = vmatprep.mubr.msk.f32.mxu0 %vm811_vm2, %v986_v63  ;;  %v555_v63 = vadd.f32 %v1579_v37, %v1375_v48  ;;  %v580_v30 = vadd.f32 %v1375_v48, %v579_v4 }
 0x236   :  { %v1591_v12 = vpop.f32.mrf.mxu0 }
 0x238   :  { %1633 = vmatmul.mubr.msk.f32.gmra.mxu0 %vm811_vm2, %v987_v1  ;;  %v2260_v17 = vpop.f32.mrf.mxu0 }
 0x239   :  { %1635 = vmatprep.mubr.msk.f32.mxu0 %vm811_vm2, %v988_v3  ;;  %v560_v3 = vadd.f32 %v1375_v48, %v559_v42  ;;  %v595_v42 = vadd.f32 %v1591_v12, %v1375_v48 }
 0x23c   :  { %1636 = vmatmul.mubr.msk.f32.gmra.mxu0 %vm811_vm2, %v989_v7  ;;  %v565_v7 = vadd.f32 %v1582_v41, %v1375_v48 }
 0x23d   :  { %1638 = vmatprep.mubr.msk.f32.mxu0 %vm811_vm2, %v990_v6  ;;  %v575_v6 = vadd.f32 %v1585_v43, %v1375_v48 }
 0x240   :  { %1639 = vmatmul.mubr.msk.f32.gmra.mxu0 %vm811_vm2, %v991_v35 }
 0x241   :  { %1641 = vmatprep.mubr.msk.f32.mxu0 %vm811_vm2, %v992_v39  ;;  %v570_v39 = vadd.f32 %v1375_v48, %v569_v44 }
 0x244   :  { %1642 = vmatmul.mubr.msk.f32.gmra.mxu0 %vm811_vm2, %v993_v10 }
 0x245   :  { %1644 = vmatprep.mubr.msk.f32.mxu0 %vm811_vm2, %v994_v11 }
 0x248   :  { %1645 = vmatmul.mubr.msk.f32.gmra.mxu0 %vm811_vm2, %v995_v15 }
 0x249   :  { %1647 = vmatprep.mubr.msk.f32.mxu0 %vm811_vm2, %v996_v16 }
 0x24c   :  { %1648 = vmatmul.mubr.msk.f32.gmra.mxu0 %vm811_vm2, %v997_v9 }
 0x2f0   :  { %v1628_v22 = vpop.f32.mrf.mxu0 }
 0x2f1   :  { %v1197_v0 = vmul.f32 %v1628_v22, %v525_v23 }
 0x2f2   :  { %v1117_v29 = vpop.f32.mrf.mxu0 }
 0x2f3   :  { %v1196_v60 = vmul.f32 %v1117_v29, %v520_v13  ;;  %v1227_v11 = vsel %vm110_vm0, %v1197_v0, 0.0 }
 0x2f4   :  { %v1631_v47 = vpop.f32.mrf.mxu0 }
 0x2f5   :  { %v1199_v58 = vmul.f32 %v1631_v47, %v535_v8  ;;  %v1212_v40 = vsel %vm110_vm0, %v1196_v60, 0.0 }
 0x2f6   :  { %v1127_v49 = vpop.f32.mrf.mxu0 }
 0x2f7   :  { %v1198_v54 = vmul.f32 %v1127_v49, %v530_v52  ;;  %v1228_v32 = vsel %vm110_vm0, %v1199_v58, 0.0  ;;  %v590_v49 = vadd.f32 %v1375_v48, %v2260_v17  ;;  %v1425_v17 = vld [vmem:[%s2301_s8] ss:$0 sm:$0xff] }
 0x2f8   :  { %v1634_v50 = vpop.f32.mrf.mxu0  ;;  %v1229_v18 = vadd.f32 %v1228_v32, %v1227_v11 }
 0x2f9   :  { %v1201_v46 = vmul.f32 %v1634_v50, %v545_v55  ;;  %v1213_v5 = vsel %vm110_vm0, %v1198_v54, 0.0 }
 0x2fa   :  { %v1137_v21 = vpop.f32.mrf.mxu0  ;;  %v1214_v14 = vadd.f32 %v1213_v5, %v1212_v40 }
 0x2fb   :  { %v1200_v62 = vmul.f32 %v1137_v21, %v540_v19  ;;  %v1230_v2 = vsel %vm110_vm0, %v1201_v46, 0.0 }
 0x2fc   :  { %v1637_v51 = vpop.f32.mrf.mxu0  ;;  %v1231_v31 = vadd.f32 %v1230_v2, %v1229_v18 }
 0x2fd   :  { %v1203_v57 = vmul.f32 %v1637_v51, %v555_v63  ;;  %v1215_v61 = vsel %vm110_vm0, %v1200_v62, 0.0 }
 0x2fe   :  { %v1147_v53 = vpop.f32.mrf.mxu0  ;;  %v1216_v25 = vadd.f32 %v1215_v61, %v1214_v14 }
 0x2ff   :  { %v1202_v56 = vmul.f32 %v1147_v53, %v550_v59  ;;  %v1232_v26 = vsel %vm110_vm0, %v1203_v57, 0.0 }
 0x300   :  { %v1640_v36 = vpop.f32.mrf.mxu0  ;;  %v1233_v43 = vadd.f32 %v1232_v26, %v1231_v31 }
 0x301   :  { %v1205_v15 = vmul.f32 %v1640_v36, %v565_v7  ;;  %v1217_v9 = vsel %vm110_vm0, %v1202_v56, 0.0 }
 0x302   :  { %v1157_v1 = vpop.f32.mrf.mxu0  ;;  %v1218_v34 = vadd.f32 %v1217_v9, %v1216_v25 }
 0x303   :  { %v1204_v10 = vmul.f32 %v1157_v1, %v560_v3  ;;  %v1234_v37 = vsel %vm110_vm0, %v1205_v15, 0.0 }
 0x304   :  { %v1643_v35 = vpop.f32.mrf.mxu0  ;;  %v1235_v4 = vadd.f32 %v1234_v37, %v1233_v43 }
 0x305   :  { %v1207_v27 = vmul.f32 %v1643_v35, %v575_v6  ;;  %v1219_v33 = vsel %vm110_vm0, %v1204_v10, 0.0 }
 0x306   :  { %v1167_v16 = vpop.f32.mrf.mxu0  ;;  %v1220_v45 = vadd.f32 %v1219_v33, %v1218_v34 }
 0x307   :  { %v1206_v20 = vmul.f32 %v1167_v16, %v570_v39  ;;  %v1236_v29 = vsel %vm110_vm0, %v1207_v27, 0.0 }
 0x308   :  { %v1646_v28 = vpop.f32.mrf.mxu0  ;;  %v1237_v53 = vadd.f32 %v1236_v29, %v1235_v4 }
 0x309   :  { %v1209_v38 = vmul.f32 %v1646_v28, %v585_v24  ;;  %v1221_v44 = vsel %vm110_vm0, %v1206_v20, 0.0 }
 0x30a   :  { %v1177_v41 = vpop.f32.mrf.mxu0  ;;  %v1222_v51 = vadd.f32 %v1221_v44, %v1220_v45 }
 0x30b   :  { %v1208_v22 = vmul.f32 %v1177_v41, %v580_v30  ;;  %v1238_v52 = vsel %vm110_vm0, %v1209_v38, 0.0 }
 0x30c   :  { %v1649_v47 = vpop.f32.mrf.mxu0  ;;  %v1239_v54 = vadd.f32 %v1238_v52, %v1237_v53 }
 0x30d   :  { %v1223_v50 = vsel %vm110_vm0, %v1208_v22, 0.0  ;;  %v1211_v21 = vmul.f32 %v1649_v47, %v595_v42 }
 0x30e   :  { %v1187_v8 = vpop.f32.mrf.mxu0  ;;  %v1224_v13 = vadd.f32 %v1223_v50, %v1222_v51 }
 0x30f   :  { %v1210_v12 = vmul.f32 %v1187_v8, %v590_v49  ;;  %v1240_v19 = vsel %vm110_vm0, %v1211_v21, 0.0 }
 0x310   :  { %v1241_v58 = vadd.f32 %v1240_v19, %v1239_v54 }
 0x311   :  { %v1225_v23 = vsel %vm110_vm0, %v1210_v12, 0.0 }
 0x312   :  { %v1226_v55 = vadd.f32 %v1225_v23, %v1224_v13 }
 0x314   :  { %1658 = vmatprep.mubr.msk.f32.mxu1 %vm110_vm0, %v1226_v55 }
 0x315   :  { %1659 = vmatmul.mubr.msk.f32.vlgmr.msra.gmra.mxu1 %vm110_vm0, %v1241_v58 }
 0x3d5   :  { %v1660_v48 = vpop.f32.mrf.mxu1 }
 0x3d6   :  { %v1331_v36 = vadd.f32 %v1660_v48, %v1425_v17 }
 0x3d7   :  { %v1325_v59 = vpop.f32.mrf.mxu1 }
 0x3d8   :  { %1335 = vst [vmem:[#allocation10 + $0x8] sm:$0xff] %v1331_v36  ;;  %v1326_v60 = vadd.f32 %v1425_v17, %v1325_v59 }
 0x3da   :  { %1334 = vst [vmem:[#allocation10] sm:$0xff] %v1326_v60 }
 0x3db   :  { %1799 = shalt.err (!%p1796_p10)
}
 0x3dc   :  { %1347 = dma.vmem_to_hbm [thread:$0]  %s1342_s5, 256, %s2304_s11, [#allocation4], %s1818_s22, %s1818_s22, %s1819_s23  }
 0x3dd   :  { %1814 = dma.done.wait [#allocation4], 256  }
 0x3de   :  { %1815 = vsyncadd [#allocation4], 4294967040 }
 0x3df   :  { %1351 = vsyncpa [#allocation3], 1 }
 0x3e0   :  { %1352 = vsyncpa [#allocation6], 1 }
 0x3e1   :  { %1353 = vsyncpa [#allocation9], 1 }
 0x3e2   :  { %1354 = vsyncpa [#allocation4], 1 }

</bundles_post_ra>
